<compile_context>
chip_gen: v6e
topology: v6e:2x2x1
jax: 0.10.0
libtpu: 0.0.40
codegen_flags: <defaults>
</compile_context>

<pallas_src>
import functools

import jax
import jax.numpy as jnp
import numpy as np
from jax import lax
from jax.experimental import pallas as pl
from jax.experimental.pallas import tpu as pltpu

F32 = jnp.float32
BF16 = jnp.bfloat16


# ----------------------------- shared math helpers -------------------------- #

def _hswish(x):
    return x * jnp.clip(x + 3.0, 0.0, 6.0) / 6.0


def _mxu(a, b):
    """bf16-operand MXU matmul with f32 accumulation."""
    return jnp.dot(a.astype(BF16), b.astype(BF16), preferred_element_type=F32)


def _conv1d_cl(u, w_ref, stride):
    """1-D conv, channels-last, 'same' zero padding of K//2, arbitrary stride.

    u      : (L, Cin) f32 value held in registers/VMEM.
    w_ref  : (K, Cin, Cout) tap-major weight ref.
    Implemented as K shifted matmuls (no im2col); stride applied afterwards with a
    small 0/1 row-selection matmul so no strided value slices are required.
    """
    L, _ = u.shape
    K = w_ref.shape[0]
    Cin = w_ref.shape[1]
    pad = K // 2
    Lfull = L + 2 * pad - K + 1

    if pad > 0:
        zpad = jnp.zeros((pad, Cin), F32)
        u_pad = jnp.concatenate([zpad, u, zpad], axis=0)
    else:
        u_pad = u

    acc = None
    for t in range(K):
        part = jnp.dot(u_pad[t:t + Lfull, :].astype(BF16),
                       w_ref[t].astype(BF16),
                       preferred_element_type=F32)
        acc = part if acc is None else acc + part

    if stride > 1:
        Lout = (L + 2 * pad - K) // stride + 1
        row = lax.broadcasted_iota(jnp.int32, (Lout, Lfull), 0)
        col = lax.broadcasted_iota(jnp.int32, (Lout, Lfull), 1)
        sel = (col == row * stride).astype(F32)          # exact 0/1 row selection
        acc = jnp.dot(sel, acc, preferred_element_type=F32)
    return acc


# ----------------------------- Pallas kernels ------------------------------- #

def _make_stage_a_kernel(stride1):
    """donsample_conv (conv -> h_swish -> BN, x3) fused with the k/v linear projections."""

    def conv_act_bn(u, w_ref, a_ref, stride):
        y = _conv1d_cl(u, w_ref, stride) + a_ref[0:1, :]     # conv + bias
        y = _hswish(y)
        return y * a_ref[1:2, :] + a_ref[2:3, :]             # folded BN (inference)

    def kernel(x_ref, w1_ref, a1_ref, w2_ref, a2_ref, w3_ref, a3_ref,
               wk_ref, wv_ref, h_ref, ko_ref, vo_ref):
        u = x_ref[0].T.astype(F32)                           # (N, C) channels-last
        u = conv_act_bn(u, w1_ref, a1_ref, stride1)
        u = conv_act_bn(u, w2_ref, a2_ref, 1)
        u = conv_act_bn(u, w3_ref, a3_ref, 1)                # (n, C)
        h_ref[0] = u.astype(h_ref.dtype)
        # k / v linear projections (qkv_bias=False -> no bias operand at all)
        ko_ref[0] = _mxu(u, wk_ref[...]).astype(ko_ref.dtype)
        vo_ref[0] = _mxu(u, wv_ref[...]).astype(vo_ref.dtype)

    return kernel


def _make_attn_kernel(c, num_heads, conv_stride, scale, eps=1e-5):
    """q projection + k/v convs + multi-head attention + proj + residual + LayerNorm."""
    hd = c // num_heads

    def kernel(h_ref, kin_ref, vin_ref, wq_ref, kw_ref, kb_ref, vw_ref, vb_ref,
               pw_ref, pb_ref, ln_ref, o_ref):
        n = h_ref.shape[1]
        h = h_ref[0].astype(F32)                             # (n, c) = short_cut
        q = _mxu(h, wq_ref[...])                             # (n, c)

        # k/v convs (conv -> BN -> h_swish; BN already folded into weights/bias)
        kc = _hswish(_conv1d_cl(kin_ref[0].astype(F32), kw_ref, conv_stride) + kb_ref[...])
        vc = _hswish(_conv1d_cl(vin_ref[0].astype(F32), vw_ref, conv_stride) + vb_ref[...])

        # per-head attention via block-diagonal (channel-masked) full-width matmuls
        ch = lax.broadcasted_iota(jnp.int32, (1, c), 1)
        o = jnp.zeros((n, c), F32)
        for head in range(num_heads):
            m = ((ch >= head * hd) & (ch < (head + 1) * hd)).astype(F32)     # (1, c)
            s = lax.dot_general(q.astype(BF16), (kc * m).astype(BF16),
                                (((1,), (1,)), ((), ())),
                                preferred_element_type=F32) * scale          # (n, n2)
            s = s - jnp.max(s, axis=-1, keepdims=True)
            e = jnp.exp(s)
            p_att = e * pl.reciprocal(jnp.sum(e, axis=-1, keepdims=True), approx=True)
            o = o + jnp.dot(p_att.astype(BF16), (vc * m).astype(BF16),
                            preferred_element_type=F32)

        o = _mxu(o, pw_ref[...]) + pb_ref[...]               # liner_proj
        x = h + o                                            # residual
        mu = jnp.mean(x, axis=-1, keepdims=True)
        var = jnp.mean((x - mu) ** 2, axis=-1, keepdims=True)
        y = (x - mu) * lax.rsqrt(var + eps)
        o_ref[0] = (y * ln_ref[0:1, :] + ln_ref[1:2, :]).astype(o_ref.dtype)

    return kernel


def _make_convproj_kernel():
    """conv_projection: conv(3) -> h_swish -> conv(1) -> h_swish -> + shortcut."""

    def kernel(x_ref, w1_ref, b1_ref, w2_ref, b2_ref, o_ref):
        xcf = x_ref[0].astype(F32)                           # (c, n) channels-first
        u = xcf.T                                            # (n, c) channels-last
        y = _hswish(_conv1d_cl(u, w1_ref, 1) + b1_ref[...])  # (n, ratio*c)
        y = _hswish(_conv1d_cl(y, w2_ref, 1) + b2_ref[...])  # (n, c)
        o_ref[0] = (xcf + y.T).astype(o_ref.dtype)

    return kernel


def _make_ln_kernel(eps=1e-5):
    def kernel(x_ref, g_ref, b_ref, o_ref):
        x = x_ref[0].astype(F32)
        mu = jnp.mean(x, axis=-1, keepdims=True)
        var = jnp.mean((x - mu) ** 2, axis=-1, keepdims=True)
        y = (x - mu) * lax.rsqrt(var + eps)
        o_ref[0] = (y * g_ref[...] + b_ref[...]).astype(o_ref.dtype)

    return kernel


# ----------------------------- spec helpers --------------------------------- #

def _const_spec(a):
    nd = a.ndim
    return pl.BlockSpec(a.shape, lambda b, nd=nd: (0,) * nd)


def _batch_spec(shape):
    nd = len(shape)
    return pl.BlockSpec((1,) + tuple(shape), lambda b, nd=nd: (b,) + (0,) * nd)


# ----------------------------- full block (Pallas path) --------------------- #

def convformer_forward_pallas(x, p, *, num_heads, k, s, conv_k, conv_s, ratio=4):
    B, C, N = x.shape
    H = num_heads
    hd = C // H
    scale = hd ** (-0.5)
    n = (N + 2 * (k // 2) - k) // s + 1                      # length after downsample conv

    # ---- trace-time weight prep (pure layout transforms / BN folding) ----
    def taps(w):                                             # (Cout, Cin, K) -> (K, Cin, Cout)
        return jnp.transpose(w, (2, 1, 0))

    def aff(bias, sc, sh):                                   # rows: [bias, bn_scale, bn_shift]
        return jnp.stack([bias, sc, sh], axis=0)

    ds1_w, ds1_a = taps(p["ds1_w"]), aff(p["ds1_b"], p["bn1_scale"], p["bn1_shift"])
    ds2_w, ds2_a = taps(p["ds2_w"]), aff(p["ds2_b"], p["bn2_scale"], p["bn2_shift"])
    ds3_w, ds3_a = taps(p["ds3_w"]), aff(p["ds3_b"], p["bn3_scale"], p["bn3_shift"])
    wq_t = p["qkv_w"][0:C].T
    wk_t = p["qkv_w"][C:2 * C].T
    wv_t = p["qkv_w"][2 * C:3 * C].T
    # BN of the k/v convs (conv -> BN -> h_swish) folded into weight+bias
    kcw = taps(p["kconv_w"]) * p["kbn_scale"][None, None, :]
    kcb = (p["kconv_b"] * p["kbn_scale"] + p["kbn_shift"]).reshape(1, C)
    vcw = taps(p["vconv_w"]) * p["vbn_scale"][None, None, :]
    vcb = (p["vconv_b"] * p["vbn_scale"] + p["vbn_shift"]).reshape(1, C)
    pw_t = p["proj_w"].T
    pb = p["proj_b"].reshape(1, C)
    ln_a = jnp.stack([p["ln_a_g"], p["ln_a_b"]], axis=0)     # (2, C)
    cp1_w, cp1_b = taps(p["cp1_w"]), p["cp1_b"].reshape(1, ratio * C)
    cp2_w, cp2_b = taps(p["cp2_w"]), p["cp2_b"].reshape(1, C)
    ln_p_g = p["ln_p_g"].reshape(1, C)
    ln_p_b = p["ln_p_b"].reshape(1, C)

    cp = pltpu.CompilerParams(dimension_semantics=("parallel",))

    # ---- kernel A: donsample_conv fused (3 convs) + k/v linear projections ----
    a_inputs = (x, ds1_w, ds1_a, ds2_w, ds2_a, ds3_w, ds3_a, wk_t, wv_t)
    h, k_nc, v_nc = pl.pallas_call(
        _make_stage_a_kernel(s),
        grid=(B,),
        in_specs=[_batch_spec((C, N))] + [_const_spec(a) for a in a_inputs[1:]],
        out_specs=(_batch_spec((n, C)), _batch_spec((n, C)), _batch_spec((n, C))),
        out_shape=(jax.ShapeDtypeStruct((B, n, C), x.dtype),
                   jax.ShapeDtypeStruct((B, n, C), x.dtype),
                   jax.ShapeDtypeStruct((B, n, C), x.dtype)),
        compiler_params=cp,
    )(*a_inputs)

    # torch: k.reshape(b,n,3,H,hd).permute(...)[1].reshape(-1, n, c)  (head scramble)
    # kept as cheap exact XLA reshapes/transpose between kernels.
    def scramble(t):
        return t.reshape(B, n, H, hd).transpose(0, 2, 1, 3).reshape(B, n, C)

    k_scr = scramble(k_nc)
    v_scr = scramble(v_nc)

    # ---- kernel B: q proj + k/v convs + attention + proj + residual + LayerNorm ----
    b_inputs = (h, k_scr, v_scr, wq_t, kcw, kcb, vcw, vcb, pw_t, pb, ln_a)
    xa = pl.pallas_call(
        _make_attn_kernel(C, H, conv_s, scale),
        grid=(B,),
        in_specs=[_batch_spec((n, C))] * 3 + [_const_spec(a) for a in b_inputs[3:]],
        out_specs=_batch_spec((n, C)),
        out_shape=jax.ShapeDtypeStruct((B, n, C), x.dtype),
        compiler_params=cp,
    )(*b_inputs)

    xcf = xa.reshape(B, C, n)                                # torch .view(b, c, n) -- free

    # ---- kernel C: conv_projection convs + residual ----
    c_inputs = (xcf, cp1_w, cp1_b, cp2_w, cp2_b)
    z = pl.pallas_call(
        _make_convproj_kernel(),
        grid=(B,),
        in_specs=[_batch_spec((C, n))] + [_const_spec(a) for a in c_inputs[1:]],
        out_specs=_batch_spec((C, n)),
        out_shape=jax.ShapeDtypeStruct((B, C, n), x.dtype),
        compiler_params=cp,
    )(*c_inputs)

    zr = z.reshape(B, n, C)                                  # torch .reshape(b, -1, c) -- free

    # ---- kernel D: final LayerNorm ----
    out = pl.pallas_call(
        _make_ln_kernel(),
        grid=(B,),
        in_specs=[_batch_spec((n, C)), _const_spec(ln_p_g), _const_spec(ln_p_b)],
        out_specs=_batch_spec((n, C)),
        out_shape=jax.ShapeDtypeStruct((B, n, C), x.dtype),
        compiler_params=cp,
    )(zr, ln_p_g, ln_p_b)

    return out.reshape(B, C, n)                              # torch .view(b, c, -1) -- free


# ----------------------------- pure-JAX reference ---------------------------- #

def reference_forward(x, p, *, num_heads, k, s, conv_k, conv_s):
    def conv1d(x, w, bias, stride, pad):
        y = lax.conv_general_dilated(x, w, window_strides=(stride,),
                                     padding=[(pad, pad)],
                                     dimension_numbers=("NCH", "OIH", "NCH"))
        return y + bias[None, :, None]

    def bn(x, scale, shift):
        return x * scale[None, :, None] + shift[None, :, None]

    def ln(x, g, bvec, eps=1e-5):
        mu = jnp.mean(x, -1, keepdims=True)
        var = jnp.mean((x - mu) ** 2, -1, keepdims=True)
        return (x - mu) / jnp.sqrt(var + eps) * g + bvec

    h = bn(_hswish(conv1d(x, p["ds1_w"], p["ds1_b"], s, k // 2)), p["bn1_scale"], p["bn1_shift"])
    h = bn(_hswish(conv1d(h, p["ds2_w"], p["ds2_b"], 1, 1)), p["bn2_scale"], p["bn2_shift"])
    h = bn(_hswish(conv1d(h, p["ds3_w"], p["ds3_b"], 1, 1)), p["bn3_scale"], p["bn3_shift"])
    h = jnp.transpose(h, (0, 2, 1))
    b, n, c = h.shape
    H = num_heads
    hd = c // H
    scale = hd ** (-0.5)

    short = h
    qkv = h @ p["qkv_w"].T
    qkv = qkv.reshape(b, n, 3, H, hd).transpose(2, 0, 3, 1, 4)
    q, kk, vv = qkv[0], qkv[1], qkv[2]
    kk = jnp.swapaxes(kk.reshape(b, n, c), -2, -1)
    vv = jnp.swapaxes(vv.reshape(b, n, c), -2, -1)
    kk = _hswish(bn(conv1d(kk, p["kconv_w"], p["kconv_b"], conv_s, conv_k // 2),
                    p["kbn_scale"], p["kbn_shift"]))
    vv = _hswish(bn(conv1d(vv, p["vconv_w"], p["vconv_b"], conv_s, conv_k // 2),
                    p["vbn_scale"], p["vbn_shift"]))
    n2 = kk.shape[-1]
    kk = kk.reshape(b, H, hd, n2)
    vv = vv.reshape(b, H, hd, n2).transpose(0, 1, 3, 2)
    attn = jnp.einsum("bhqd,bhdk->bhqk", q, kk) * scale
    attn = jax.nn.softmax(attn, axis=-1)
    o = jnp.einsum("bhqk,bhkd->bhqd", attn, vv)
    o = jnp.transpose(o, (0, 2, 1, 3)).reshape(b, n, c)
    o = o @ p["proj_w"].T + p["proj_b"]
    xa = ln(short + o, p["ln_a_g"], p["ln_a_b"])
    xcf = xa.reshape(b, c, n)

    short2 = xcf
    y = _hswish(conv1d(xcf, p["cp1_w"], p["cp1_b"], 1, 1))
    y = _hswish(conv1d(y, p["cp2_w"], p["cp2_b"], 1, 0))
    y = (short2 + y).reshape(b, n, c)
    y = ln(y, p["ln_p_g"], p["ln_p_b"])
    return y.reshape(b, c, n)


# ----------------------------- parameter init -------------------------------- #

def init_params(key, c, k, conv_k, ratio=4):
    ks = iter(jax.random.split(key, 64))   # plenty of keys (fixes previous StopIteration)

    def nrm(shape, scl=0.1):
        return scl * jax.random.normal(next(ks), shape, jnp.float32)

    def bn_fold(ch):
        gamma = 1.0 + 0.1 * jax.random.normal(next(ks), (ch,), jnp.float32)
        beta = 0.1 * jax.random.normal(next(ks), (ch,), jnp.float32)
        rm = 0.1 * jax.random.normal(next(ks), (ch,), jnp.float32)
        rv = 1.0 + 0.1 * jax.random.uniform(next(ks), (ch,), jnp.float32)
        scale = gamma / jnp.sqrt(rv + 1e-5)
        shift = beta - rm * scale
        return scale, shift

    p = {}
    # donsample_conv
    p["ds1_w"], p["ds1_b"] = nrm((c, c, k)), nrm((c,))
    p["bn1_scale"], p["bn1_shift"] = bn_fold(c)
    p["ds2_w"], p["ds2_b"] = nrm((2 * c, c, 3)), nrm((2 * c,))
    p["bn2_scale"], p["bn2_shift"] = bn_fold(2 * c)
    p["ds3_w"], p["ds3_b"] = nrm((c, 2 * c, 3)), nrm((c,))
    p["bn3_scale"], p["bn3_shift"] = bn_fold(c)
    # Sparse_Attention
    p["qkv_w"] = nrm((3 * c, c))
    p["kconv_w"], p["kconv_b"] = nrm((c, c, conv_k)), nrm((c,))
    p["kbn_scale"], p["kbn_shift"] = bn_fold(c)
    p["vconv_w"], p["vconv_b"] = nrm((c, c, conv_k)), nrm((c,))
    p["vbn_scale"], p["vbn_shift"] = bn_fold(c)
    p["proj_w"], p["proj_b"] = nrm((c, c)), nrm((c,))
    p["ln_a_g"] = 1.0 + 0.1 * jax.random.normal(next(ks), (c,), jnp.float32)
    p["ln_a_b"] = 0.1 * jax.random.normal(next(ks), (c,), jnp.float32)
    # conv_projection
    p["cp1_w"], p["cp1_b"] = nrm((ratio * c, c, 3)), nrm((ratio * c,))
    p["cp2_w"], p["cp2_b"] = nrm((c, ratio * c, 1)), nrm((c,))
    p["ln_p_g"] = 1.0 + 0.1 * jax.random.normal(next(ks), (c,), jnp.float32)
    p["ln_p_b"] = 0.1 * jax.random.normal(next(ks), (c,), jnp.float32)
    return p


# ----------------------------- main ------------------------------------------ #

if __name__ == "__main__":
    B, C, N = 2, 16, 16            # batch, channels (dim), sequence length
    k, s = 3, 2                    # donsample_conv kernel / stride
    conv_k, conv_s = 3, 2          # attention k/v conv kernel / stride
    num_heads = 4

    key = jax.random.PRNGKey(0)
    key_p, key_x = jax.random.split(key)
    params = init_params(key_p, C, k, conv_k)
    x = jax.random.normal(key_x, (B, C, N), jnp.float32)

    fwd = jax.jit(functools.partial(convformer_forward_pallas, p=params,
                                    num_heads=num_heads, k=k, s=s,
                                    conv_k=conv_k, conv_s=conv_s))
    out = jax.block_until_ready(fwd(x))

    ref = jax.block_until_ready(
        reference_forward(x, params, num_heads=num_heads, k=k, s=s,
                          conv_k=conv_k, conv_s=conv_s))

    assert out.shape == ref.shape, (out.shape, ref.shape)
    np.testing.assert_allclose(np.asarray(out), np.asarray(ref),
                               rtol=3e-2, atol=3e-2)
    print("KERNEL_OK")
</pallas_src>

<mosaic_0001>
module attributes {stable_mosaic.version = 11 : i64} {
  func.func @kernel(%arg0: i32, %arg1: memref<1x16x16xf32, #tpu.memory_space<vmem>>, %arg2: memref<3x16x16xf32, #tpu.memory_space<vmem>>, %arg3: memref<3x16xf32, #tpu.memory_space<vmem>>, %arg4: memref<3x16x32xf32, #tpu.memory_space<vmem>>, %arg5: memref<3x32xf32, #tpu.memory_space<vmem>>, %arg6: memref<3x32x16xf32, #tpu.memory_space<vmem>>, %arg7: memref<3x16xf32, #tpu.memory_space<vmem>>, %arg8: memref<16x16xf32, #tpu.memory_space<vmem>>, %arg9: memref<16x16xf32, #tpu.memory_space<vmem>>, %arg10: memref<1x8x16xf32, #tpu.memory_space<vmem>>, %arg11: memref<1x8x16xf32, #tpu.memory_space<vmem>>, %arg12: memref<1x8x16xf32, #tpu.memory_space<vmem>>) attributes {dimension_semantics = [#tpu.dimension_semantics<parallel>], iteration_bounds = array<i64: 2>, scalar_prefetch = 0 : i64, scratch_operands = 0 : i64, tpu.core_type = #tpu.core_type<tc>, window_params = [{transform_indices = @transform_0, window_bounds = array<i64: 1, 16, 16>}, {pipeline_mode = #tpu.pipeline_mode<synchronous>, transform_indices = @transform_1, window_bounds = array<i64: 3, 16, 16>}, {pipeline_mode = #tpu.pipeline_mode<synchronous>, transform_indices = @transform_2, window_bounds = array<i64: 3, 16>}, {pipeline_mode = #tpu.pipeline_mode<synchronous>, transform_indices = @transform_3, window_bounds = array<i64: 3, 16, 32>}, {pipeline_mode = #tpu.pipeline_mode<synchronous>, transform_indices = @transform_4, window_bounds = array<i64: 3, 32>}, {pipeline_mode = #tpu.pipeline_mode<synchronous>, transform_indices = @transform_5, window_bounds = array<i64: 3, 32, 16>}, {pipeline_mode = #tpu.pipeline_mode<synchronous>, transform_indices = @transform_6, window_bounds = array<i64: 3, 16>}, {pipeline_mode = #tpu.pipeline_mode<synchronous>, transform_indices = @transform_7, window_bounds = array<i64: 16, 16>}, {pipeline_mode = #tpu.pipeline_mode<synchronous>, transform_indices = @transform_8, window_bounds = array<i64: 16, 16>}, {transform_indices = @transform_9, window_bounds = array<i64: 1, 8, 16>}, {transform_indices = @transform_10, window_bounds = array<i64: 1, 8, 16>}, {transform_indices = @transform_11, window_bounds = array<i64: 1, 8, 16>}]} {
    %c0 = arith.constant 0 : index
    %c0_0 = arith.constant 0 : index
    %c0_1 = arith.constant 0 : index
    %0 = vector.load %arg1[%c0, %c0_0, %c0_1] : memref<1x16x16xf32, #tpu.memory_space<vmem>>, vector<1x16x16xf32>
    %1 = vector.shape_cast %0 : vector<1x16x16xf32> to vector<16x16xf32>
    %2 = tpu.transpose %1, [1, 0] : vector<16x16xf32> -> vector<16x16xf32>
    %cst = arith.constant 0.000000e+00 : f32
    %3 = vector.broadcast %cst : f32 to vector<1x16xf32>
    %4 = tpu.concatenate %3, %2, %3 in 0 : vector<1x16xf32>, vector<16x16xf32>, vector<1x16xf32> -> vector<18x16xf32>
    %5 = vector.extract_strided_slice %4 {offsets = [0, 0], sizes = [16, 16], strides = [1, 1]} : vector<18x16xf32> to vector<16x16xf32>
    %6 = arith.truncf %5 : vector<16x16xf32> to vector<16x16xbf16>
    %c0_2 = arith.constant 0 : index
    %c0_3 = arith.constant 0 : index
    %c0_4 = arith.constant 0 : index
    %7 = vector.load %arg2[%c0_2, %c0_3, %c0_4] : memref<3x16x16xf32, #tpu.memory_space<vmem>>, vector<1x16x16xf32>
    %8 = vector.shape_cast %7 : vector<1x16x16xf32> to vector<16x16xf32>
    %9 = arith.truncf %8 : vector<16x16xf32> to vector<16x16xbf16>
    %cst_5 = arith.constant dense<0.000000e+00> : vector<16x16xf32>
    %10 = tpu.matmul %6, %9, %cst_5 {dimension_numbers = #tpu.dot_dimension_numbers<[1], [0], [0], [1], [0, 0, 1, 1], [], []>} : vector<16x16xbf16>, vector<16x16xbf16>, vector<16x16xf32> -> vector<16x16xf32>
    %11 = vector.extract_strided_slice %4 {offsets = [1, 0], sizes = [16, 16], strides = [1, 1]} : vector<18x16xf32> to vector<16x16xf32>
    %12 = arith.truncf %11 : vector<16x16xf32> to vector<16x16xbf16>
    %c1 = arith.constant 1 : index
    %c0_6 = arith.constant 0 : index
    %c0_7 = arith.constant 0 : index
    %13 = vector.load %arg2[%c1, %c0_6, %c0_7] : memref<3x16x16xf32, #tpu.memory_space<vmem>>, vector<1x16x16xf32>
    %14 = vector.shape_cast %13 : vector<1x16x16xf32> to vector<16x16xf32>
    %15 = arith.truncf %14 : vector<16x16xf32> to vector<16x16xbf16>
    %cst_8 = arith.constant dense<0.000000e+00> : vector<16x16xf32>
    %16 = tpu.matmul %12, %15, %cst_8 {dimension_numbers = #tpu.dot_dimension_numbers<[1], [0], [0], [1], [0, 0, 1, 1], [], []>} : vector<16x16xbf16>, vector<16x16xbf16>, vector<16x16xf32> -> vector<16x16xf32>
    %17 = arith.addf %10, %16 : vector<16x16xf32>
    %18 = vector.extract_strided_slice %4 {offsets = [2, 0], sizes = [16, 16], strides = [1, 1]} : vector<18x16xf32> to vector<16x16xf32>
    %19 = arith.truncf %18 : vector<16x16xf32> to vector<16x16xbf16>
    %c2 = arith.constant 2 : index
    %c0_9 = arith.constant 0 : index
    %c0_10 = arith.constant 0 : index
    %20 = vector.load %arg2[%c2, %c0_9, %c0_10] : memref<3x16x16xf32, #tpu.memory_space<vmem>>, vector<1x16x16xf32>
    %21 = vector.shape_cast %20 : vector<1x16x16xf32> to vector<16x16xf32>
    %22 = arith.truncf %21 : vector<16x16xf32> to vector<16x16xbf16>
    %cst_11 = arith.constant dense<0.000000e+00> : vector<16x16xf32>
    %23 = tpu.matmul %19, %22, %cst_11 {dimension_numbers = #tpu.dot_dimension_numbers<[1], [0], [0], [1], [0, 0, 1, 1], [], []>} : vector<16x16xbf16>, vector<16x16xbf16>, vector<16x16xf32> -> vector<16x16xf32>
    %24 = arith.addf %17, %23 : vector<16x16xf32>
    %25 = tpu.iota {dimensions = array<i32: 0>} : vector<8x16xi32>
    %26 = tpu.iota {dimensions = array<i32: 1>} : vector<8x16xi32>
    %c2_i32 = arith.constant 2 : i32
    %27 = vector.broadcast %c2_i32 : i32 to vector<8x16xi32>
    %28 = arith.muli %25, %27 : vector<8x16xi32>
    %29 = arith.cmpi eq, %26, %28 : vector<8x16xi32>
    %30 = arith.extui %29 : vector<8x16xi1> to vector<8x16xi32>
    %31 = arith.sitofp %30 : vector<8x16xi32> to vector<8x16xf32>
    %cst_12 = arith.constant dense<0.000000e+00> : vector<8x16xf32>
    %32 = tpu.matmul %31, %24, %cst_12 {dimension_numbers = #tpu.dot_dimension_numbers<[1], [0], [0], [1], [0, 0, 1, 1], [], []>} : vector<8x16xf32>, vector<16x16xf32>, vector<8x16xf32> -> vector<8x16xf32>
    %c0_13 = arith.constant 0 : index
    %c0_14 = arith.constant 0 : index
    %33 = vector.load %arg3[%c0_13, %c0_14] : memref<3x16xf32, #tpu.memory_space<vmem>>, vector<1x16xf32>
    %34 = vector.broadcast %33 : vector<1x16xf32> to vector<8x16xf32>
    %35 = arith.addf %32, %34 : vector<8x16xf32>
    %cst_15 = arith.constant 3.000000e+00 : f32
    %36 = vector.broadcast %cst_15 : f32 to vector<8x16xf32>
    %37 = arith.addf %35, %36 : vector<8x16xf32>
    %cst_16 = arith.constant 0.000000e+00 : f32
    %cst_17 = arith.constant 6.000000e+00 : f32
    %38 = vector.broadcast %cst_16 : f32 to vector<8x16xf32>
    %39 = arith.maximumf %38, %37 : vector<8x16xf32>
    %40 = vector.broadcast %cst_17 : f32 to vector<8x16xf32>
    %41 = arith.minimumf %40, %39 : vector<8x16xf32>
    %42 = arith.mulf %35, %41 : vector<8x16xf32>
    %cst_18 = arith.constant 6.000000e+00 : f32
    %43 = vector.broadcast %cst_18 : f32 to vector<8x16xf32>
    %44 = arith.divf %42, %43 : vector<8x16xf32>
    %c1_19 = arith.constant 1 : index
    %c0_20 = arith.constant 0 : index
    %45 = vector.load %arg3[%c1_19, %c0_20] : memref<3x16xf32, #tpu.memory_space<vmem>>, vector<1x16xf32>
    %46 = vector.broadcast %45 : vector<1x16xf32> to vector<8x16xf32>
    %47 = arith.mulf %44, %46 : vector<8x16xf32>
    %c2_21 = arith.constant 2 : index
    %c0_22 = arith.constant 0 : index
    %48 = vector.load %arg3[%c2_21, %c0_22] : memref<3x16xf32, #tpu.memory_space<vmem>>, vector<1x16xf32>
    %49 = vector.broadcast %48 : vector<1x16xf32> to vector<8x16xf32>
    %50 = arith.addf %47, %49 : vector<8x16xf32>
    %cst_23 = arith.constant 0.000000e+00 : f32
    %51 = vector.broadcast %cst_23 : f32 to vector<1x16xf32>
    %52 = tpu.concatenate %51, %50, %51 in 0 : vector<1x16xf32>, vector<8x16xf32>, vector<1x16xf32> -> vector<10x16xf32>
    %53 = vector.extract_strided_slice %52 {offsets = [0, 0], sizes = [8, 16], strides = [1, 1]} : vector<10x16xf32> to vector<8x16xf32>
    %54 = arith.truncf %53 : vector<8x16xf32> to vector<8x16xbf16>
    %c0_24 = arith.constant 0 : index
    %c0_25 = arith.constant 0 : index
    %c0_26 = arith.constant 0 : index
    %55 = vector.load %arg4[%c0_24, %c0_25, %c0_26] : memref<3x16x32xf32, #tpu.memory_space<vmem>>, vector<1x16x32xf32>
    %56 = vector.shape_cast %55 : vector<1x16x32xf32> to vector<16x32xf32>
    %57 = arith.truncf %56 : vector<16x32xf32> to vector<16x32xbf16>
    %cst_27 = arith.constant dense<0.000000e+00> : vector<8x32xf32>
    %58 = tpu.matmul %54, %57, %cst_27 {dimension_numbers = #tpu.dot_dimension_numbers<[1], [0], [0], [1], [0, 0, 1, 1], [], []>} : vector<8x16xbf16>, vector<16x32xbf16>, vector<8x32xf32> -> vector<8x32xf32>
    %59 = vector.extract_strided_slice %52 {offsets = [1, 0], sizes = [8, 16], strides = [1, 1]} : vector<10x16xf32> to vector<8x16xf32>
    %60 = arith.truncf %59 : vector<8x16xf32> to vector<8x16xbf16>
    %c1_28 = arith.constant 1 : index
    %c0_29 = arith.constant 0 : index
    %c0_30 = arith.constant 0 : index
    %61 = vector.load %arg4[%c1_28, %c0_29, %c0_30] : memref<3x16x32xf32, #tpu.memory_space<vmem>>, vector<1x16x32xf32>
    %62 = vector.shape_cast %61 : vector<1x16x32xf32> to vector<16x32xf32>
    %63 = arith.truncf %62 : vector<16x32xf32> to vector<16x32xbf16>
    %cst_31 = arith.constant dense<0.000000e+00> : vector<8x32xf32>
    %64 = tpu.matmul %60, %63, %cst_31 {dimension_numbers = #tpu.dot_dimension_numbers<[1], [0], [0], [1], [0, 0, 1, 1], [], []>} : vector<8x16xbf16>, vector<16x32xbf16>, vector<8x32xf32> -> vector<8x32xf32>
    %65 = arith.addf %58, %64 : vector<8x32xf32>
    %66 = vector.extract_strided_slice %52 {offsets = [2, 0], sizes = [8, 16], strides = [1, 1]} : vector<10x16xf32> to vector<8x16xf32>
    %67 = arith.truncf %66 : vector<8x16xf32> to vector<8x16xbf16>
    %c2_32 = arith.constant 2 : index
    %c0_33 = arith.constant 0 : index
    %c0_34 = arith.constant 0 : index
    %68 = vector.load %arg4[%c2_32, %c0_33, %c0_34] : memref<3x16x32xf32, #tpu.memory_space<vmem>>, vector<1x16x32xf32>
    %69 = vector.shape_cast %68 : vector<1x16x32xf32> to vector<16x32xf32>
    %70 = arith.truncf %69 : vector<16x32xf32> to vector<16x32xbf16>
    %cst_35 = arith.constant dense<0.000000e+00> : vector<8x32xf32>
    %71 = tpu.matmul %67, %70, %cst_35 {dimension_numbers = #tpu.dot_dimension_numbers<[1], [0], [0], [1], [0, 0, 1, 1], [], []>} : vector<8x16xbf16>, vector<16x32xbf16>, vector<8x32xf32> -> vector<8x32xf32>
    %72 = arith.addf %65, %71 : vector<8x32xf32>
    %c0_36 = arith.constant 0 : index
    %c0_37 = arith.constant 0 : index
    %73 = vector.load %arg5[%c0_36, %c0_37] : memref<3x32xf32, #tpu.memory_space<vmem>>, vector<1x32xf32>
    %74 = vector.broadcast %73 : vector<1x32xf32> to vector<8x32xf32>
    %75 = arith.addf %72, %74 : vector<8x32xf32>
    %cst_38 = arith.constant 3.000000e+00 : f32
    %76 = vector.broadcast %cst_38 : f32 to vector<8x32xf32>
    %77 = arith.addf %75, %76 : vector<8x32xf32>
    %cst_39 = arith.constant 0.000000e+00 : f32
    %cst_40 = arith.constant 6.000000e+00 : f32
    %78 = vector.broadcast %cst_39 : f32 to vector<8x32xf32>
    %79 = arith.maximumf %78, %77 : vector<8x32xf32>
    %80 = vector.broadcast %cst_40 : f32 to vector<8x32xf32>
    %81 = arith.minimumf %80, %79 : vector<8x32xf32>
    %82 = arith.mulf %75, %81 : vector<8x32xf32>
    %cst_41 = arith.constant 6.000000e+00 : f32
    %83 = vector.broadcast %cst_41 : f32 to vector<8x32xf32>
    %84 = arith.divf %82, %83 : vector<8x32xf32>
    %c1_42 = arith.constant 1 : index
    %c0_43 = arith.constant 0 : index
    %85 = vector.load %arg5[%c1_42, %c0_43] : memref<3x32xf32, #tpu.memory_space<vmem>>, vector<1x32xf32>
    %86 = vector.broadcast %85 : vector<1x32xf32> to vector<8x32xf32>
    %87 = arith.mulf %84, %86 : vector<8x32xf32>
    %c2_44 = arith.constant 2 : index
    %c0_45 = arith.constant 0 : index
    %88 = vector.load %arg5[%c2_44, %c0_45] : memref<3x32xf32, #tpu.memory_space<vmem>>, vector<1x32xf32>
    %89 = vector.broadcast %88 : vector<1x32xf32> to vector<8x32xf32>
    %90 = arith.addf %87, %89 : vector<8x32xf32>
    %cst_46 = arith.constant 0.000000e+00 : f32
    %91 = vector.broadcast %cst_46 : f32 to vector<1x32xf32>
    %92 = tpu.concatenate %91, %90, %91 in 0 : vector<1x32xf32>, vector<8x32xf32>, vector<1x32xf32> -> vector<10x32xf32>
    %93 = vector.extract_strided_slice %92 {offsets = [0, 0], sizes = [8, 32], strides = [1, 1]} : vector<10x32xf32> to vector<8x32xf32>
    %94 = arith.truncf %93 : vector<8x32xf32> to vector<8x32xbf16>
    %c0_47 = arith.constant 0 : index
    %c0_48 = arith.constant 0 : index
    %c0_49 = arith.constant 0 : index
    %95 = vector.load %arg6[%c0_47, %c0_48, %c0_49] : memref<3x32x16xf32, #tpu.memory_space<vmem>>, vector<1x32x16xf32>
    %96 = vector.shape_cast %95 : vector<1x32x16xf32> to vector<32x16xf32>
    %97 = arith.truncf %96 : vector<32x16xf32> to vector<32x16xbf16>
    %cst_50 = arith.constant dense<0.000000e+00> : vector<8x16xf32>
    %98 = tpu.matmul %94, %97, %cst_50 {dimension_numbers = #tpu.dot_dimension_numbers<[1], [0], [0], [1], [0, 0, 1, 1], [], []>} : vector<8x32xbf16>, vector<32x16xbf16>, vector<8x16xf32> -> vector<8x16xf32>
    %99 = vector.extract_strided_slice %92 {offsets = [1, 0], sizes = [8, 32], strides = [1, 1]} : vector<10x32xf32> to vector<8x32xf32>
    %100 = arith.truncf %99 : vector<8x32xf32> to vector<8x32xbf16>
    %c1_51 = arith.constant 1 : index
    %c0_52 = arith.constant 0 : index
    %c0_53 = arith.constant 0 : index
    %101 = vector.load %arg6[%c1_51, %c0_52, %c0_53] : memref<3x32x16xf32, #tpu.memory_space<vmem>>, vector<1x32x16xf32>
    %102 = vector.shape_cast %101 : vector<1x32x16xf32> to vector<32x16xf32>
    %103 = arith.truncf %102 : vector<32x16xf32> to vector<32x16xbf16>
    %cst_54 = arith.constant dense<0.000000e+00> : vector<8x16xf32>
    %104 = tpu.matmul %100, %103, %cst_54 {dimension_numbers = #tpu.dot_dimension_numbers<[1], [0], [0], [1], [0, 0, 1, 1], [], []>} : vector<8x32xbf16>, vector<32x16xbf16>, vector<8x16xf32> -> vector<8x16xf32>
    %105 = arith.addf %98, %104 : vector<8x16xf32>
    %106 = vector.extract_strided_slice %92 {offsets = [2, 0], sizes = [8, 32], strides = [1, 1]} : vector<10x32xf32> to vector<8x32xf32>
    %107 = arith.truncf %106 : vector<8x32xf32> to vector<8x32xbf16>
    %c2_55 = arith.constant 2 : index
    %c0_56 = arith.constant 0 : index
    %c0_57 = arith.constant 0 : index
    %108 = vector.load %arg6[%c2_55, %c0_56, %c0_57] : memref<3x32x16xf32, #tpu.memory_space<vmem>>, vector<1x32x16xf32>
    %109 = vector.shape_cast %108 : vector<1x32x16xf32> to vector<32x16xf32>
    %110 = arith.truncf %109 : vector<32x16xf32> to vector<32x16xbf16>
    %cst_58 = arith.constant dense<0.000000e+00> : vector<8x16xf32>
    %111 = tpu.matmul %107, %110, %cst_58 {dimension_numbers = #tpu.dot_dimension_numbers<[1], [0], [0], [1], [0, 0, 1, 1], [], []>} : vector<8x32xbf16>, vector<32x16xbf16>, vector<8x16xf32> -> vector<8x16xf32>
    %112 = arith.addf %105, %111 : vector<8x16xf32>
    %c0_59 = arith.constant 0 : index
    %c0_60 = arith.constant 0 : index
    %113 = vector.load %arg7[%c0_59, %c0_60] : memref<3x16xf32, #tpu.memory_space<vmem>>, vector<1x16xf32>
    %114 = vector.broadcast %113 : vector<1x16xf32> to vector<8x16xf32>
    %115 = arith.addf %112, %114 : vector<8x16xf32>
    %cst_61 = arith.constant 3.000000e+00 : f32
    %116 = vector.broadcast %cst_61 : f32 to vector<8x16xf32>
    %117 = arith.addf %115, %116 : vector<8x16xf32>
    %cst_62 = arith.constant 0.000000e+00 : f32
    %cst_63 = arith.constant 6.000000e+00 : f32
    %118 = vector.broadcast %cst_62 : f32 to vector<8x16xf32>
    %119 = arith.maximumf %118, %117 : vector<8x16xf32>
    %120 = vector.broadcast %cst_63 : f32 to vector<8x16xf32>
    %121 = arith.minimumf %120, %119 : vector<8x16xf32>
    %122 = arith.mulf %115, %121 : vector<8x16xf32>
    %cst_64 = arith.constant 6.000000e+00 : f32
    %123 = vector.broadcast %cst_64 : f32 to vector<8x16xf32>
    %124 = arith.divf %122, %123 : vector<8x16xf32>
    %c1_65 = arith.constant 1 : index
    %c0_66 = arith.constant 0 : index
    %125 = vector.load %arg7[%c1_65, %c0_66] : memref<3x16xf32, #tpu.memory_space<vmem>>, vector<1x16xf32>
    %126 = vector.broadcast %125 : vector<1x16xf32> to vector<8x16xf32>
    %127 = arith.mulf %124, %126 : vector<8x16xf32>
    %c2_67 = arith.constant 2 : index
    %c0_68 = arith.constant 0 : index
    %128 = vector.load %arg7[%c2_67, %c0_68] : memref<3x16xf32, #tpu.memory_space<vmem>>, vector<1x16xf32>
    %129 = vector.broadcast %128 : vector<1x16xf32> to vector<8x16xf32>
    %130 = arith.addf %127, %129 : vector<8x16xf32>
    %c0_69 = arith.constant 0 : index
    %c0_70 = arith.constant 0 : index
    %c0_71 = arith.constant 0 : index
    %131 = vector.load %arg10[%c0_69, %c0_70, %c0_71] : memref<1x8x16xf32, #tpu.memory_space<vmem>>, vector<1x8x16xf32>
    %132 = vector.shape_cast %131 : vector<1x8x16xf32> to vector<8x16xf32>
    %133 = vector.shape_cast %130 : vector<8x16xf32> to vector<1x8x16xf32>
    tpu.vector_store %arg10[%c0_69, %c0_70, %c0_71], %133 {strides = array<i32>} : memref<1x8x16xf32, #tpu.memory_space<vmem>>, vector<1x8x16xf32>,
    %c0_72 = arith.constant 0 : index
    %c0_73 = arith.constant 0 : index
    %134 = vector.load %arg8[%c0_72, %c0_73] : memref<16x16xf32, #tpu.memory_space<vmem>>, vector<16x16xf32>
    %135 = arith.truncf %130 : vector<8x16xf32> to vector<8x16xbf16>
    %136 = arith.truncf %134 : vector<16x16xf32> to vector<16x16xbf16>
    %cst_74 = arith.constant dense<0.000000e+00> : vector<8x16xf32>
    %137 = tpu.matmul %135, %136, %cst_74 {dimension_numbers = #tpu.dot_dimension_numbers<[1], [0], [0], [1], [0, 0, 1, 1], [], []>} : vector<8x16xbf16>, vector<16x16xbf16>, vector<8x16xf32> -> vector<8x16xf32>
    %c0_75 = arith.constant 0 : index
    %c0_76 = arith.constant 0 : index
    %c0_77 = arith.constant 0 : index
    %138 = vector.load %arg11[%c0_75, %c0_76, %c0_77] : memref<1x8x16xf32, #tpu.memory_space<vmem>>, vector<1x8x16xf32>
    %139 = vector.shape_cast %138 : vector<1x8x16xf32> to vector<8x16xf32>
    %140 = vector.shape_cast %137 : vector<8x16xf32> to vector<1x8x16xf32>
    tpu.vector_store %arg11[%c0_75, %c0_76, %c0_77], %140 {strides = array<i32>} : memref<1x8x16xf32, #tpu.memory_space<vmem>>, vector<1x8x16xf32>,
    %c0_78 = arith.constant 0 : index
    %c0_79 = arith.constant 0 : index
    %141 = vector.load %arg9[%c0_78, %c0_79] : memref<16x16xf32, #tpu.memory_space<vmem>>, vector<16x16xf32>
    %142 = arith.truncf %130 : vector<8x16xf32> to vector<8x16xbf16>
    %143 = arith.truncf %141 : vector<16x16xf32> to vector<16x16xbf16>
    %cst_80 = arith.constant dense<0.000000e+00> : vector<8x16xf32>
    %144 = tpu.matmul %142, %143, %cst_80 {dimension_numbers = #tpu.dot_dimension_numbers<[1], [0], [0], [1], [0, 0, 1, 1], [], []>} : vector<8x16xbf16>, vector<16x16xbf16>, vector<8x16xf32> -> vector<8x16xf32>
    %c0_81 = arith.constant 0 : index
    %c0_82 = arith.constant 0 : index
    %c0_83 = arith.constant 0 : index
    %145 = vector.load %arg12[%c0_81, %c0_82, %c0_83] : memref<1x8x16xf32, #tpu.memory_space<vmem>>, vector<1x8x16xf32>
    %146 = vector.shape_cast %145 : vector<1x8x16xf32> to vector<8x16xf32>
    %147 = vector.shape_cast %144 : vector<8x16xf32> to vector<1x8x16xf32>
    tpu.vector_store %arg12[%c0_81, %c0_82, %c0_83], %147 {strides = array<i32>} : memref<1x8x16xf32, #tpu.memory_space<vmem>>, vector<1x8x16xf32>,
    return
  }
  func.func @transform_0(%arg0: i32) -> (i32, i32, i32) {
    %c0_i32 = arith.constant 0 : i32
    %c0_i32_0 = arith.constant 0 : i32
    %c0_i32_1 = arith.constant 0 : i32
    return %arg0, %c0_i32, %c0_i32_0 : i32, i32, i32
  }
  func.func @transform_1(%arg0: i32) -> (i32, i32, i32) {
    %c0_i32 = arith.constant 0 : i32
    %c0_i32_0 = arith.constant 0 : i32
    %c0_i32_1 = arith.constant 0 : i32
    %c0_i32_2 = arith.constant 0 : i32
    return %c0_i32, %c0_i32_0, %c0_i32_1 : i32, i32, i32
  }
  func.func @transform_2(%arg0: i32) -> (i32, i32) {
    %c0_i32 = arith.constant 0 : i32
    %c0_i32_0 = arith.constant 0 : i32
    %c0_i32_1 = arith.constant 0 : i32
    return %c0_i32, %c0_i32_0 : i32, i32
  }
  func.func @transform_3(%arg0: i32) -> (i32, i32, i32) {
    %c0_i32 = arith.constant 0 : i32
    %c0_i32_0 = arith.constant 0 : i32
    %c0_i32_1 = arith.constant 0 : i32
    %c0_i32_2 = arith.constant 0 : i32
    return %c0_i32, %c0_i32_0, %c0_i32_1 : i32, i32, i32
  }
  func.func @transform_4(%arg0: i32) -> (i32, i32) {
    %c0_i32 = arith.constant 0 : i32
    %c0_i32_0 = arith.constant 0 : i32
    %c0_i32_1 = arith.constant 0 : i32
    return %c0_i32, %c0_i32_0 : i32, i32
  }
  func.func @transform_5(%arg0: i32) -> (i32, i32, i32) {
    %c0_i32 = arith.constant 0 : i32
    %c0_i32_0 = arith.constant 0 : i32
    %c0_i32_1 = arith.constant 0 : i32
    %c0_i32_2 = arith.constant 0 : i32
    return %c0_i32, %c0_i32_0, %c0_i32_1 : i32, i32, i32
  }
  func.func @transform_6(%arg0: i32) -> (i32, i32) {
    %c0_i32 = arith.constant 0 : i32
    %c0_i32_0 = arith.constant 0 : i32
    %c0_i32_1 = arith.constant 0 : i32
    return %c0_i32, %c0_i32_0 : i32, i32
  }
  func.func @transform_7(%arg0: i32) -> (i32, i32) {
    %c0_i32 = arith.constant 0 : i32
    %c0_i32_0 = arith.constant 0 : i32
    %c0_i32_1 = arith.constant 0 : i32
    return %c0_i32, %c0_i32_0 : i32, i32
  }
  func.func @transform_8(%arg0: i32) -> (i32, i32) {
    %c0_i32 = arith.constant 0 : i32
    %c0_i32_0 = arith.constant 0 : i32
    %c0_i32_1 = arith.constant 0 : i32
    return %c0_i32, %c0_i32_0 : i32, i32
  }
  func.func @transform_9(%arg0: i32) -> (i32, i32, i32) {
    %c0_i32 = arith.constant 0 : i32
    %c0_i32_0 = arith.constant 0 : i32
    %c0_i32_1 = arith.constant 0 : i32
    return %arg0, %c0_i32, %c0_i32_0 : i32, i32, i32
  }
  func.func @transform_10(%arg0: i32) -> (i32, i32, i32) {
    %c0_i32 = arith.constant 0 : i32
    %c0_i32_0 = arith.constant 0 : i32
    %c0_i32_1 = arith.constant 0 : i32
    return %arg0, %c0_i32, %c0_i32_0 : i32, i32, i32
  }
  func.func @transform_11(%arg0: i32) -> (i32, i32, i32) {
    %c0_i32 = arith.constant 0 : i32
    %c0_i32_0 = arith.constant 0 : i32
    %c0_i32_1 = arith.constant 0 : i32
    return %arg0, %c0_i32, %c0_i32_0 : i32, i32, i32
  }
}

module attributes {stable_mosaic.version = 11 : i64} {
  func.func @kernel(%arg0: i32, %arg1: memref<1x16x8xf32, #tpu.memory_space<vmem>>, %arg2: memref<3x16x64xf32, #tpu.memory_space<vmem>>, %arg3: memref<1x64xf32, #tpu.memory_space<vmem>>, %arg4: memref<1x64x16xf32, #tpu.memory_space<vmem>>, %arg5: memref<1x16xf32, #tpu.memory_space<vmem>>, %arg6: memref<1x16x8xf32, #tpu.memory_space<vmem>>) attributes {dimension_semantics = [#tpu.dimension_semantics<parallel>], iteration_bounds = array<i64: 2>, scalar_prefetch = 0 : i64, scratch_operands = 0 : i64, tpu.core_type = #tpu.core_type<tc>, window_params = [{transform_indices = @transform_0, window_bounds = array<i64: 1, 16, 8>}, {pipeline_mode = #tpu.pipeline_mode<synchronous>, transform_indices = @transform_1, window_bounds = array<i64: 3, 16, 64>}, {pipeline_mode = #tpu.pipeline_mode<synchronous>, transform_indices = @transform_2, window_bounds = array<i64: 1, 64>}, {pipeline_mode = #tpu.pipeline_mode<synchronous>, transform_indices = @transform_3, window_bounds = array<i64: 1, 64, 16>}, {pipeline_mode = #tpu.pipeline_mode<synchronous>, transform_indices = @transform_4, window_bounds = array<i64: 1, 16>}, {transform_indices = @transform_5, window_bounds = array<i64: 1, 16, 8>}]} {
    %c0 = arith.constant 0 : index
    %c0_0 = arith.constant 0 : index
    %c0_1 = arith.constant 0 : index
    %0 = vector.load %arg1[%c0, %c0_0, %c0_1] : memref<1x16x8xf32, #tpu.memory_space<vmem>>, vector<1x16x8xf32>
    %1 = vector.shape_cast %0 : vector<1x16x8xf32> to vector<16x8xf32>
    %2 = tpu.transpose %1, [1, 0] : vector<16x8xf32> -> vector<8x16xf32>
    %cst = arith.constant 0.000000e+00 : f32
    %3 = vector.broadcast %cst : f32 to vector<1x16xf32>
    %4 = tpu.concatenate %3, %2, %3 in 0 : vector<1x16xf32>, vector<8x16xf32>, vector<1x16xf32> -> vector<10x16xf32>
    %5 = vector.extract_strided_slice %4 {offsets = [0, 0], sizes = [8, 16], strides = [1, 1]} : vector<10x16xf32> to vector<8x16xf32>
    %6 = arith.truncf %5 : vector<8x16xf32> to vector<8x16xbf16>
    %c0_2 = arith.constant 0 : index
    %c0_3 = arith.constant 0 : index
    %c0_4 = arith.constant 0 : index
    %7 = vector.load %arg2[%c0_2, %c0_3, %c0_4] : memref<3x16x64xf32, #tpu.memory_space<vmem>>, vector<1x16x64xf32>
    %8 = vector.shape_cast %7 : vector<1x16x64xf32> to vector<16x64xf32>
    %9 = arith.truncf %8 : vector<16x64xf32> to vector<16x64xbf16>
    %cst_5 = arith.constant dense<0.000000e+00> : vector<8x64xf32>
    %10 = tpu.matmul %6, %9, %cst_5 {dimension_numbers = #tpu.dot_dimension_numbers<[1], [0], [0], [1], [0, 0, 1, 1], [], []>} : vector<8x16xbf16>, vector<16x64xbf16>, vector<8x64xf32> -> vector<8x64xf32>
    %11 = vector.extract_strided_slice %4 {offsets = [1, 0], sizes = [8, 16], strides = [1, 1]} : vector<10x16xf32> to vector<8x16xf32>
    %12 = arith.truncf %11 : vector<8x16xf32> to vector<8x16xbf16>
    %c1 = arith.constant 1 : index
    %c0_6 = arith.constant 0 : index
    %c0_7 = arith.constant 0 : index
    %13 = vector.load %arg2[%c1, %c0_6, %c0_7] : memref<3x16x64xf32, #tpu.memory_space<vmem>>, vector<1x16x64xf32>
    %14 = vector.shape_cast %13 : vector<1x16x64xf32> to vector<16x64xf32>
    %15 = arith.truncf %14 : vector<16x64xf32> to vector<16x64xbf16>
    %cst_8 = arith.constant dense<0.000000e+00> : vector<8x64xf32>
    %16 = tpu.matmul %12, %15, %cst_8 {dimension_numbers = #tpu.dot_dimension_numbers<[1], [0], [0], [1], [0, 0, 1, 1], [], []>} : vector<8x16xbf16>, vector<16x64xbf16>, vector<8x64xf32> -> vector<8x64xf32>
    %17 = arith.addf %10, %16 : vector<8x64xf32>
    %18 = vector.extract_strided_slice %4 {offsets = [2, 0], sizes = [8, 16], strides = [1, 1]} : vector<10x16xf32> to vector<8x16xf32>
    %19 = arith.truncf %18 : vector<8x16xf32> to vector<8x16xbf16>
    %c2 = arith.constant 2 : index
    %c0_9 = arith.constant 0 : index
    %c0_10 = arith.constant 0 : index
    %20 = vector.load %arg2[%c2, %c0_9, %c0_10] : memref<3x16x64xf32, #tpu.memory_space<vmem>>, vector<1x16x64xf32>
    %21 = vector.shape_cast %20 : vector<1x16x64xf32> to vector<16x64xf32>
    %22 = arith.truncf %21 : vector<16x64xf32> to vector<16x64xbf16>
    %cst_11 = arith.constant dense<0.000000e+00> : vector<8x64xf32>
    %23 = tpu.matmul %19, %22, %cst_11 {dimension_numbers = #tpu.dot_dimension_numbers<[1], [0], [0], [1], [0, 0, 1, 1], [], []>} : vector<8x16xbf16>, vector<16x64xbf16>, vector<8x64xf32> -> vector<8x64xf32>
    %24 = arith.addf %17, %23 : vector<8x64xf32>
    %c0_12 = arith.constant 0 : index
    %c0_13 = arith.constant 0 : index
    %25 = vector.load %arg3[%c0_12, %c0_13] : memref<1x64xf32, #tpu.memory_space<vmem>>, vector<1x64xf32>
    %26 = vector.broadcast %25 : vector<1x64xf32> to vector<8x64xf32>
    %27 = arith.addf %24, %26 : vector<8x64xf32>
    %cst_14 = arith.constant 3.000000e+00 : f32
    %28 = vector.broadcast %cst_14 : f32 to vector<8x64xf32>
    %29 = arith.addf %27, %28 : vector<8x64xf32>
    %cst_15 = arith.constant 0.000000e+00 : f32
    %cst_16 = arith.constant 6.000000e+00 : f32
    %30 = vector.broadcast %cst_15 : f32 to vector<8x64xf32>
    %31 = arith.maximumf %30, %29 : vector<8x64xf32>
    %32 = vector.broadcast %cst_16 : f32 to vector<8x64xf32>
    %33 = arith.minimumf %32, %31 : vector<8x64xf32>
    %34 = arith.mulf %27, %33 : vector<8x64xf32>
    %cst_17 = arith.constant 6.000000e+00 : f32
    %35 = vector.broadcast %cst_17 : f32 to vector<8x64xf32>
    %36 = arith.divf %34, %35 : vector<8x64xf32>
    %37 = arith.truncf %36 : vector<8x64xf32> to vector<8x64xbf16>
    %c0_18 = arith.constant 0 : index
    %c0_19 = arith.constant 0 : index
    %c0_20 = arith.constant 0 : index
    %38 = vector.load %arg4[%c0_18, %c0_19, %c0_20] : memref<1x64x16xf32, #tpu.memory_space<vmem>>, vector<1x64x16xf32>
    %39 = vector.shape_cast %38 : vector<1x64x16xf32> to vector<64x16xf32>
    %40 = arith.truncf %39 : vector<64x16xf32> to vector<64x16xbf16>
    %cst_21 = arith.constant dense<0.000000e+00> : vector<8x16xf32>
    %41 = tpu.matmul %37, %40, %cst_21 {dimension_numbers = #tpu.dot_dimension_numbers<[1], [0], [0], [1], [0, 0, 1, 1], [], []>} : vector<8x64xbf16>, vector<64x16xbf16>, vector<8x16xf32> -> vector<8x16xf32>
    %c0_22 = arith.constant 0 : index
    %c0_23 = arith.constant 0 : index
    %42 = vector.load %arg5[%c0_22, %c0_23] : memref<1x16xf32, #tpu.memory_space<vmem>>, vector<1x16xf32>
    %43 = vector.broadcast %42 : vector<1x16xf32> to vector<8x16xf32>
    %44 = arith.addf %41, %43 : vector<8x16xf32>
    %cst_24 = arith.constant 3.000000e+00 : f32
    %45 = vector.broadcast %cst_24 : f32 to vector<8x16xf32>
    %46 = arith.addf %44, %45 : vector<8x16xf32>
    %cst_25 = arith.constant 0.000000e+00 : f32
    %cst_26 = arith.constant 6.000000e+00 : f32
    %47 = vector.broadcast %cst_25 : f32 to vector<8x16xf32>
    %48 = arith.maximumf %47, %46 : vector<8x16xf32>
    %49 = vector.broadcast %cst_26 : f32 to vector<8x16xf32>
    %50 = arith.minimumf %49, %48 : vector<8x16xf32>
    %51 = arith.mulf %44, %50 : vector<8x16xf32>
    %cst_27 = arith.constant 6.000000e+00 : f32
    %52 = vector.broadcast %cst_27 : f32 to vector<8x16xf32>
    %53 = arith.divf %51, %52 : vector<8x16xf32>
    %54 = tpu.transpose %53, [1, 0] : vector<8x16xf32> -> vector<16x8xf32>
    %55 = arith.addf %1, %54 : vector<16x8xf32>
    %c0_28 = arith.constant 0 : index
    %c0_29 = arith.constant 0 : index
    %c0_30 = arith.constant 0 : index
    %56 = vector.load %arg6[%c0_28, %c0_29, %c0_30] : memref<1x16x8xf32, #tpu.memory_space<vmem>>, vector<1x16x8xf32>
    %57 = vector.shape_cast %56 : vector<1x16x8xf32> to vector<16x8xf32>
    %58 = vector.shape_cast %55 : vector<16x8xf32> to vector<1x16x8xf32>
    tpu.vector_store %arg6[%c0_28, %c0_29, %c0_30], %58 {strides = array<i32>} : memref<1x16x8xf32, #tpu.memory_space<vmem>>, vector<1x16x8xf32>,
    return
  }
  func.func @transform_0(%arg0: i32) -> (i32, i32, i32) {
    %c0_i32 = arith.constant 0 : i32
    %c0_i32_0 = arith.constant 0 : i32
    %c0_i32_1 = arith.constant 0 : i32
    return %arg0, %c0_i32, %c0_i32_0 : i32, i32, i32
  }
  func.func @transform_1(%arg0: i32) -> (i32, i32, i32) {
    %c0_i32 = arith.constant 0 : i32
    %c0_i32_0 = arith.constant 0 : i32
    %c0_i32_1 = arith.constant 0 : i32
    %c0_i32_2 = arith.constant 0 : i32
    return %c0_i32, %c0_i32_0, %c0_i32_1 : i32, i32, i32
  }
  func.func @transform_2(%arg0: i32) -> (i32, i32) {
    %c0_i32 = arith.constant 0 : i32
    %c0_i32_0 = arith.constant 0 : i32
    %c0_i32_1 = arith.constant 0 : i32
    return %c0_i32, %c0_i32_0 : i32, i32
  }
  func.func @transform_3(%arg0: i32) -> (i32, i32, i32) {
    %c0_i32 = arith.constant 0 : i32
    %c0_i32_0 = arith.constant 0 : i32
    %c0_i32_1 = arith.constant 0 : i32
    %c0_i32_2 = arith.constant 0 : i32
    return %c0_i32, %c0_i32_0, %c0_i32_1 : i32, i32, i32
  }
  func.func @transform_4(%arg0: i32) -> (i32, i32) {
    %c0_i32 = arith.constant 0 : i32
    %c0_i32_0 = arith.constant 0 : i32
    %c0_i32_1 = arith.constant 0 : i32
    return %c0_i32, %c0_i32_0 : i32, i32
  }
  func.func @transform_5(%arg0: i32) -> (i32, i32, i32) {
    %c0_i32 = arith.constant 0 : i32
    %c0_i32_0 = arith.constant 0 : i32
    %c0_i32_1 = arith.constant 0 : i32
    return %arg0, %c0_i32, %c0_i32_0 : i32, i32, i32
  }
}

module attributes {stable_mosaic.version = 11 : i64} {
  func.func @kernel(%arg0: i32, %arg1: memref<1x8x16xf32, #tpu.memory_space<vmem>>, %arg2: memref<1x8x16xf32, #tpu.memory_space<vmem>>, %arg3: memref<1x8x16xf32, #tpu.memory_space<vmem>>, %arg4: memref<16x16xf32, #tpu.memory_space<vmem>>, %arg5: memref<3x16x16xf32, #tpu.memory_space<vmem>>, %arg6: memref<1x16xf32, #tpu.memory_space<vmem>>, %arg7: memref<3x16x16xf32, #tpu.memory_space<vmem>>, %arg8: memref<1x16xf32, #tpu.memory_space<vmem>>, %arg9: memref<16x16xf32, #tpu.memory_space<vmem>>, %arg10: memref<1x16xf32, #tpu.memory_space<vmem>>, %arg11: memref<2x16xf32, #tpu.memory_space<vmem>>, %arg12: memref<1x8x16xf32, #tpu.memory_space<vmem>>) attributes {dimension_semantics = [#tpu.dimension_semantics<parallel>], iteration_bounds = array<i64: 2>, scalar_prefetch = 0 : i64, scratch_operands = 0 : i64, tpu.core_type = #tpu.core_type<tc>, window_params = [{transform_indices = @transform_0, window_bounds = array<i64: 1, 8, 16>}, {transform_indices = @transform_1, window_bounds = array<i64: 1, 8, 16>}, {transform_indices = @transform_2, window_bounds = array<i64: 1, 8, 16>}, {pipeline_mode = #tpu.pipeline_mode<synchronous>, transform_indices = @transform_3, window_bounds = array<i64: 16, 16>}, {pipeline_mode = #tpu.pipeline_mode<synchronous>, transform_indices = @transform_4, window_bounds = array<i64: 3, 16, 16>}, {pipeline_mode = #tpu.pipeline_mode<synchronous>, transform_indices = @transform_5, window_bounds = array<i64: 1, 16>}, {pipeline_mode = #tpu.pipeline_mode<synchronous>, transform_indices = @transform_6, window_bounds = array<i64: 3, 16, 16>}, {pipeline_mode = #tpu.pipeline_mode<synchronous>, transform_indices = @transform_7, window_bounds = array<i64: 1, 16>}, {pipeline_mode = #tpu.pipeline_mode<synchronous>, transform_indices = @transform_8, window_bounds = array<i64: 16, 16>}, {pipeline_mode = #tpu.pipeline_mode<synchronous>, transform_indices = @transform_9, window_bounds = array<i64: 1, 16>}, {pipeline_mode = #tpu.pipeline_mode<synchronous>, transform_indices = @transform_10, window_bounds = array<i64: 2, 16>}, {transform_indices = @transform_11, window_bounds = array<i64: 1, 8, 16>}]} {
    %c0 = arith.constant 0 : index
    %c0_0 = arith.constant 0 : index
    %c0_1 = arith.constant 0 : index
    %0 = vector.load %arg1[%c0, %c0_0, %c0_1] : memref<1x8x16xf32, #tpu.memory_space<vmem>>, vector<1x8x16xf32>
    %1 = vector.shape_cast %0 : vector<1x8x16xf32> to vector<8x16xf32>
    %c0_2 = arith.constant 0 : index
    %c0_3 = arith.constant 0 : index
    %2 = vector.load %arg4[%c0_2, %c0_3] : memref<16x16xf32, #tpu.memory_space<vmem>>, vector<16x16xf32>
    %3 = arith.truncf %1 : vector<8x16xf32> to vector<8x16xbf16>
    %4 = arith.truncf %2 : vector<16x16xf32> to vector<16x16xbf16>
    %cst = arith.constant dense<0.000000e+00> : vector<8x16xf32>
    %5 = tpu.matmul %3, %4, %cst {dimension_numbers = #tpu.dot_dimension_numbers<[1], [0], [0], [1], [0, 0, 1, 1], [], []>} : vector<8x16xbf16>, vector<16x16xbf16>, vector<8x16xf32> -> vector<8x16xf32>
    %c0_4 = arith.constant 0 : index
    %c0_5 = arith.constant 0 : index
    %c0_6 = arith.constant 0 : index
    %6 = vector.load %arg2[%c0_4, %c0_5, %c0_6] : memref<1x8x16xf32, #tpu.memory_space<vmem>>, vector<1x8x16xf32>
    %7 = vector.shape_cast %6 : vector<1x8x16xf32> to vector<8x16xf32>
    %cst_7 = arith.constant 0.000000e+00 : f32
    %8 = vector.broadcast %cst_7 : f32 to vector<1x16xf32>
    %9 = tpu.concatenate %8, %7, %8 in 0 : vector<1x16xf32>, vector<8x16xf32>, vector<1x16xf32> -> vector<10x16xf32>
    %10 = vector.extract_strided_slice %9 {offsets = [0, 0], sizes = [8, 16], strides = [1, 1]} : vector<10x16xf32> to vector<8x16xf32>
    %11 = arith.truncf %10 : vector<8x16xf32> to vector<8x16xbf16>
    %c0_8 = arith.constant 0 : index
    %c0_9 = arith.constant 0 : index
    %c0_10 = arith.constant 0 : index
    %12 = vector.load %arg5[%c0_8, %c0_9, %c0_10] : memref<3x16x16xf32, #tpu.memory_space<vmem>>, vector<1x16x16xf32>
    %13 = vector.shape_cast %12 : vector<1x16x16xf32> to vector<16x16xf32>
    %14 = arith.truncf %13 : vector<16x16xf32> to vector<16x16xbf16>
    %cst_11 = arith.constant dense<0.000000e+00> : vector<8x16xf32>
    %15 = tpu.matmul %11, %14, %cst_11 {dimension_numbers = #tpu.dot_dimension_numbers<[1], [0], [0], [1], [0, 0, 1, 1], [], []>} : vector<8x16xbf16>, vector<16x16xbf16>, vector<8x16xf32> -> vector<8x16xf32>
    %16 = vector.extract_strided_slice %9 {offsets = [1, 0], sizes = [8, 16], strides = [1, 1]} : vector<10x16xf32> to vector<8x16xf32>
    %17 = arith.truncf %16 : vector<8x16xf32> to vector<8x16xbf16>
    %c1 = arith.constant 1 : index
    %c0_12 = arith.constant 0 : index
    %c0_13 = arith.constant 0 : index
    %18 = vector.load %arg5[%c1, %c0_12, %c0_13] : memref<3x16x16xf32, #tpu.memory_space<vmem>>, vector<1x16x16xf32>
    %19 = vector.shape_cast %18 : vector<1x16x16xf32> to vector<16x16xf32>
    %20 = arith.truncf %19 : vector<16x16xf32> to vector<16x16xbf16>
    %cst_14 = arith.constant dense<0.000000e+00> : vector<8x16xf32>
    %21 = tpu.matmul %17, %20, %cst_14 {dimension_numbers = #tpu.dot_dimension_numbers<[1], [0], [0], [1], [0, 0, 1, 1], [], []>} : vector<8x16xbf16>, vector<16x16xbf16>, vector<8x16xf32> -> vector<8x16xf32>
    %22 = arith.addf %15, %21 : vector<8x16xf32>
    %23 = vector.extract_strided_slice %9 {offsets = [2, 0], sizes = [8, 16], strides = [1, 1]} : vector<10x16xf32> to vector<8x16xf32>
    %24 = arith.truncf %23 : vector<8x16xf32> to vector<8x16xbf16>
    %c2 = arith.constant 2 : index
    %c0_15 = arith.constant 0 : index
    %c0_16 = arith.constant 0 : index
    %25 = vector.load %arg5[%c2, %c0_15, %c0_16] : memref<3x16x16xf32, #tpu.memory_space<vmem>>, vector<1x16x16xf32>
    %26 = vector.shape_cast %25 : vector<1x16x16xf32> to vector<16x16xf32>
    %27 = arith.truncf %26 : vector<16x16xf32> to vector<16x16xbf16>
    %cst_17 = arith.constant dense<0.000000e+00> : vector<8x16xf32>
    %28 = tpu.matmul %24, %27, %cst_17 {dimension_numbers = #tpu.dot_dimension_numbers<[1], [0], [0], [1], [0, 0, 1, 1], [], []>} : vector<8x16xbf16>, vector<16x16xbf16>, vector<8x16xf32> -> vector<8x16xf32>
    %29 = arith.addf %22, %28 : vector<8x16xf32>
    %30 = tpu.iota {dimensions = array<i32: 0>} : vector<4x8xi32>
    %31 = tpu.iota {dimensions = array<i32: 1>} : vector<4x8xi32>
    %c2_i32 = arith.constant 2 : i32
    %32 = vector.broadcast %c2_i32 : i32 to vector<4x8xi32>
    %33 = arith.muli %30, %32 : vector<4x8xi32>
    %34 = arith.cmpi eq, %31, %33 : vector<4x8xi32>
    %35 = arith.extui %34 : vector<4x8xi1> to vector<4x8xi32>
    %36 = arith.sitofp %35 : vector<4x8xi32> to vector<4x8xf32>
    %cst_18 = arith.constant dense<0.000000e+00> : vector<4x16xf32>
    %37 = tpu.matmul %36, %29, %cst_18 {dimension_numbers = #tpu.dot_dimension_numbers<[1], [0], [0], [1], [0, 0, 1, 1], [], []>} : vector<4x8xf32>, vector<8x16xf32>, vector<4x16xf32> -> vector<4x16xf32>
    %c0_19 = arith.constant 0 : index
    %c0_20 = arith.constant 0 : index
    %38 = vector.load %arg6[%c0_19, %c0_20] : memref<1x16xf32, #tpu.memory_space<vmem>>, vector<1x16xf32>
    %39 = vector.broadcast %38 : vector<1x16xf32> to vector<4x16xf32>
    %40 = arith.addf %37, %39 : vector<4x16xf32>
    %cst_21 = arith.constant 3.000000e+00 : f32
    %41 = vector.broadcast %cst_21 : f32 to vector<4x16xf32>
    %42 = arith.addf %40, %41 : vector<4x16xf32>
    %cst_22 = arith.constant 0.000000e+00 : f32
    %cst_23 = arith.constant 6.000000e+00 : f32
    %43 = vector.broadcast %cst_22 : f32 to vector<4x16xf32>
    %44 = arith.maximumf %43, %42 : vector<4x16xf32>
    %45 = vector.broadcast %cst_23 : f32 to vector<4x16xf32>
    %46 = arith.minimumf %45, %44 : vector<4x16xf32>
    %47 = arith.mulf %40, %46 : vector<4x16xf32>
    %cst_24 = arith.constant 6.000000e+00 : f32
    %48 = vector.broadcast %cst_24 : f32 to vector<4x16xf32>
    %49 = arith.divf %47, %48 : vector<4x16xf32>
    %c0_25 = arith.constant 0 : index
    %c0_26 = arith.constant 0 : index
    %c0_27 = arith.constant 0 : index
    %50 = vector.load %arg3[%c0_25, %c0_26, %c0_27] : memref<1x8x16xf32, #tpu.memory_space<vmem>>, vector<1x8x16xf32>
    %51 = vector.shape_cast %50 : vector<1x8x16xf32> to vector<8x16xf32>
    %cst_28 = arith.constant 0.000000e+00 : f32
    %52 = vector.broadcast %cst_28 : f32 to vector<1x16xf32>
    %53 = tpu.concatenate %52, %51, %52 in 0 : vector<1x16xf32>, vector<8x16xf32>, vector<1x16xf32> -> vector<10x16xf32>
    %54 = vector.extract_strided_slice %53 {offsets = [0, 0], sizes = [8, 16], strides = [1, 1]} : vector<10x16xf32> to vector<8x16xf32>
    %55 = arith.truncf %54 : vector<8x16xf32> to vector<8x16xbf16>
    %c0_29 = arith.constant 0 : index
    %c0_30 = arith.constant 0 : index
    %c0_31 = arith.constant 0 : index
    %56 = vector.load %arg7[%c0_29, %c0_30, %c0_31] : memref<3x16x16xf32, #tpu.memory_space<vmem>>, vector<1x16x16xf32>
    %57 = vector.shape_cast %56 : vector<1x16x16xf32> to vector<16x16xf32>
    %58 = arith.truncf %57 : vector<16x16xf32> to vector<16x16xbf16>
    %cst_32 = arith.constant dense<0.000000e+00> : vector<8x16xf32>
    %59 = tpu.matmul %55, %58, %cst_32 {dimension_numbers = #tpu.dot_dimension_numbers<[1], [0], [0], [1], [0, 0, 1, 1], [], []>} : vector<8x16xbf16>, vector<16x16xbf16>, vector<8x16xf32> -> vector<8x16xf32>
    %60 = vector.extract_strided_slice %53 {offsets = [1, 0], sizes = [8, 16], strides = [1, 1]} : vector<10x16xf32> to vector<8x16xf32>
    %61 = arith.truncf %60 : vector<8x16xf32> to vector<8x16xbf16>
    %c1_33 = arith.constant 1 : index
    %c0_34 = arith.constant 0 : index
    %c0_35 = arith.constant 0 : index
    %62 = vector.load %arg7[%c1_33, %c0_34, %c0_35] : memref<3x16x16xf32, #tpu.memory_space<vmem>>, vector<1x16x16xf32>
    %63 = vector.shape_cast %62 : vector<1x16x16xf32> to vector<16x16xf32>
    %64 = arith.truncf %63 : vector<16x16xf32> to vector<16x16xbf16>
    %cst_36 = arith.constant dense<0.000000e+00> : vector<8x16xf32>
    %65 = tpu.matmul %61, %64, %cst_36 {dimension_numbers = #tpu.dot_dimension_numbers<[1], [0], [0], [1], [0, 0, 1, 1], [], []>} : vector<8x16xbf16>, vector<16x16xbf16>, vector<8x16xf32> -> vector<8x16xf32>
    %66 = arith.addf %59, %65 : vector<8x16xf32>
    %67 = vector.extract_strided_slice %53 {offsets = [2, 0], sizes = [8, 16], strides = [1, 1]} : vector<10x16xf32> to vector<8x16xf32>
    %68 = arith.truncf %67 : vector<8x16xf32> to vector<8x16xbf16>
    %c2_37 = arith.constant 2 : index
    %c0_38 = arith.constant 0 : index
    %c0_39 = arith.constant 0 : index
    %69 = vector.load %arg7[%c2_37, %c0_38, %c0_39] : memref<3x16x16xf32, #tpu.memory_space<vmem>>, vector<1x16x16xf32>
    %70 = vector.shape_cast %69 : vector<1x16x16xf32> to vector<16x16xf32>
    %71 = arith.truncf %70 : vector<16x16xf32> to vector<16x16xbf16>
    %cst_40 = arith.constant dense<0.000000e+00> : vector<8x16xf32>
    %72 = tpu.matmul %68, %71, %cst_40 {dimension_numbers = #tpu.dot_dimension_numbers<[1], [0], [0], [1], [0, 0, 1, 1], [], []>} : vector<8x16xbf16>, vector<16x16xbf16>, vector<8x16xf32> -> vector<8x16xf32>
    %73 = arith.addf %66, %72 : vector<8x16xf32>
    %74 = tpu.iota {dimensions = array<i32: 0>} : vector<4x8xi32>
    %75 = tpu.iota {dimensions = array<i32: 1>} : vector<4x8xi32>
    %c2_i32_41 = arith.constant 2 : i32
    %76 = vector.broadcast %c2_i32_41 : i32 to vector<4x8xi32>
    %77 = arith.muli %74, %76 : vector<4x8xi32>
    %78 = arith.cmpi eq, %75, %77 : vector<4x8xi32>
    %79 = arith.extui %78 : vector<4x8xi1> to vector<4x8xi32>
    %80 = arith.sitofp %79 : vector<4x8xi32> to vector<4x8xf32>
    %cst_42 = arith.constant dense<0.000000e+00> : vector<4x16xf32>
    %81 = tpu.matmul %80, %73, %cst_42 {dimension_numbers = #tpu.dot_dimension_numbers<[1], [0], [0], [1], [0, 0, 1, 1], [], []>} : vector<4x8xf32>, vector<8x16xf32>, vector<4x16xf32> -> vector<4x16xf32>
    %c0_43 = arith.constant 0 : index
    %c0_44 = arith.constant 0 : index
    %82 = vector.load %arg8[%c0_43, %c0_44] : memref<1x16xf32, #tpu.memory_space<vmem>>, vector<1x16xf32>
    %83 = vector.broadcast %82 : vector<1x16xf32> to vector<4x16xf32>
    %84 = arith.addf %81, %83 : vector<4x16xf32>
    %cst_45 = arith.constant 3.000000e+00 : f32
    %85 = vector.broadcast %cst_45 : f32 to vector<4x16xf32>
    %86 = arith.addf %84, %85 : vector<4x16xf32>
    %cst_46 = arith.constant 0.000000e+00 : f32
    %cst_47 = arith.constant 6.000000e+00 : f32
    %87 = vector.broadcast %cst_46 : f32 to vector<4x16xf32>
    %88 = arith.maximumf %87, %86 : vector<4x16xf32>
    %89 = vector.broadcast %cst_47 : f32 to vector<4x16xf32>
    %90 = arith.minimumf %89, %88 : vector<4x16xf32>
    %91 = arith.mulf %84, %90 : vector<4x16xf32>
    %cst_48 = arith.constant 6.000000e+00 : f32
    %92 = vector.broadcast %cst_48 : f32 to vector<4x16xf32>
    %93 = arith.divf %91, %92 : vector<4x16xf32>
    %94 = tpu.iota {dimensions = array<i32: 1>} : vector<1x16xi32>
    %cst_49 = arith.constant 0.000000e+00 : f32
    %95 = vector.broadcast %cst_49 : f32 to vector<8x16xf32>
    %c0_i32 = arith.constant 0 : i32
    %96 = vector.broadcast %c0_i32 : i32 to vector<1x16xi32>
    %97 = arith.cmpi sge, %94, %96 : vector<1x16xi32>
    %c4_i32 = arith.constant 4 : i32
    %98 = vector.broadcast %c4_i32 : i32 to vector<1x16xi32>
    %99 = arith.cmpi slt, %94, %98 : vector<1x16xi32>
    %100 = arith.andi %97, %99 : vector<1x16xi1>
    %101 = arith.extui %100 : vector<1x16xi1> to vector<1x16xi32>
    %102 = arith.sitofp %101 : vector<1x16xi32> to vector<1x16xf32>
    %103 = arith.truncf %5 : vector<8x16xf32> to vector<8x16xbf16>
    %104 = vector.broadcast %102 : vector<1x16xf32> to vector<4x16xf32>
    %105 = arith.mulf %49, %104 : vector<4x16xf32>
    %106 = arith.truncf %105 : vector<4x16xf32> to vector<4x16xbf16>
    %cst_50 = arith.constant dense<0.000000e+00> : vector<8x4xf32>
    %107 = tpu.matmul %103, %106, %cst_50 {dimension_numbers = #tpu.dot_dimension_numbers<[1], [1], [0], [0], [0, 0, 1, 0], [], []>} : vector<8x16xbf16>, vector<4x16xbf16>, vector<8x4xf32> -> vector<8x4xf32>
    %cst_51 = arith.constant 5.000000e-01 : f32
    %108 = vector.broadcast %cst_51 : f32 to vector<8x4xf32>
    %109 = arith.mulf %107, %108 : vector<8x4xf32>
    %cst_52 = arith.constant dense<0xFF800000> : vector<8xf32>
    %110 = vector.multi_reduction <maximumf>, %109, %cst_52 [1] : vector<8x4xf32> to vector<8xf32>
    %111 = vector.shape_cast %110 : vector<8xf32> to vector<8x1xf32>
    %112 = vector.broadcast %111 : vector<8x1xf32> to vector<8x4xf32>
    %113 = arith.subf %109, %112 : vector<8x4xf32>
    %114 = math.exp %113 : vector<8x4xf32>
    %cst_53 = arith.constant dense<0.000000e+00> : vector<8xf32>
    %115 = vector.multi_reduction <add>, %114, %cst_53 [1] : vector<8x4xf32> to vector<8xf32>
    %116 = vector.shape_cast %115 : vector<8xf32> to vector<8x1xf32>
    %117 = tpu.reciprocal %116 {approx = true} : vector<8x1xf32> -> vector<8x1xf32>
    %118 = vector.broadcast %117 : vector<8x1xf32> to vector<8x4xf32>
    %119 = arith.mulf %114, %118 : vector<8x4xf32>
    %120 = arith.truncf %119 : vector<8x4xf32> to vector<8x4xbf16>
    %121 = vector.broadcast %102 : vector<1x16xf32> to vector<4x16xf32>
    %122 = arith.mulf %93, %121 : vector<4x16xf32>
    %123 = arith.truncf %122 : vector<4x16xf32> to vector<4x16xbf16>
    %cst_54 = arith.constant dense<0.000000e+00> : vector<8x16xf32>
    %124 = tpu.matmul %120, %123, %cst_54 {dimension_numbers = #tpu.dot_dimension_numbers<[1], [0], [0], [1], [0, 0, 1, 1], [], []>} : vector<8x4xbf16>, vector<4x16xbf16>, vector<8x16xf32> -> vector<8x16xf32>
    %125 = arith.addf %95, %124 : vector<8x16xf32>
    %c4_i32_55 = arith.constant 4 : i32
    %126 = vector.broadcast %c4_i32_55 : i32 to vector<1x16xi32>
    %127 = arith.cmpi sge, %94, %126 : vector<1x16xi32>
    %c8_i32 = arith.constant 8 : i32
    %128 = vector.broadcast %c8_i32 : i32 to vector<1x16xi32>
    %129 = arith.cmpi slt, %94, %128 : vector<1x16xi32>
    %130 = arith.andi %127, %129 : vector<1x16xi1>
    %131 = arith.extui %130 : vector<1x16xi1> to vector<1x16xi32>
    %132 = arith.sitofp %131 : vector<1x16xi32> to vector<1x16xf32>
    %133 = arith.truncf %5 : vector<8x16xf32> to vector<8x16xbf16>
    %134 = vector.broadcast %132 : vector<1x16xf32> to vector<4x16xf32>
    %135 = arith.mulf %49, %134 : vector<4x16xf32>
    %136 = arith.truncf %135 : vector<4x16xf32> to vector<4x16xbf16>
    %cst_56 = arith.constant dense<0.000000e+00> : vector<8x4xf32>
    %137 = tpu.matmul %133, %136, %cst_56 {dimension_numbers = #tpu.dot_dimension_numbers<[1], [1], [0], [0], [0, 0, 1, 0], [], []>} : vector<8x16xbf16>, vector<4x16xbf16>, vector<8x4xf32> -> vector<8x4xf32>
    %cst_57 = arith.constant 5.000000e-01 : f32
    %138 = vector.broadcast %cst_57 : f32 to vector<8x4xf32>
    %139 = arith.mulf %137, %138 : vector<8x4xf32>
    %cst_58 = arith.constant dense<0xFF800000> : vector<8xf32>
    %140 = vector.multi_reduction <maximumf>, %139, %cst_58 [1] : vector<8x4xf32> to vector<8xf32>
    %141 = vector.shape_cast %140 : vector<8xf32> to vector<8x1xf32>
    %142 = vector.broadcast %141 : vector<8x1xf32> to vector<8x4xf32>
    %143 = arith.subf %139, %142 : vector<8x4xf32>
    %144 = math.exp %143 : vector<8x4xf32>
    %cst_59 = arith.constant dense<0.000000e+00> : vector<8xf32>
    %145 = vector.multi_reduction <add>, %144, %cst_59 [1] : vector<8x4xf32> to vector<8xf32>
    %146 = vector.shape_cast %145 : vector<8xf32> to vector<8x1xf32>
    %147 = tpu.reciprocal %146 {approx = true} : vector<8x1xf32> -> vector<8x1xf32>
    %148 = vector.broadcast %147 : vector<8x1xf32> to vector<8x4xf32>
    %149 = arith.mulf %144, %148 : vector<8x4xf32>
    %150 = arith.truncf %149 : vector<8x4xf32> to vector<8x4xbf16>
    %151 = vector.broadcast %132 : vector<1x16xf32> to vector<4x16xf32>
    %152 = arith.mulf %93, %151 : vector<4x16xf32>
    %153 = arith.truncf %152 : vector<4x16xf32> to vector<4x16xbf16>
    %cst_60 = arith.constant dense<0.000000e+00> : vector<8x16xf32>
    %154 = tpu.matmul %150, %153, %cst_60 {dimension_numbers = #tpu.dot_dimension_numbers<[1], [0], [0], [1], [0, 0, 1, 1], [], []>} : vector<8x4xbf16>, vector<4x16xbf16>, vector<8x16xf32> -> vector<8x16xf32>
    %155 = arith.addf %125, %154 : vector<8x16xf32>
    %c8_i32_61 = arith.constant 8 : i32
    %156 = vector.broadcast %c8_i32_61 : i32 to vector<1x16xi32>
    %157 = arith.cmpi sge, %94, %156 : vector<1x16xi32>
    %c12_i32 = arith.constant 12 : i32
    %158 = vector.broadcast %c12_i32 : i32 to vector<1x16xi32>
    %159 = arith.cmpi slt, %94, %158 : vector<1x16xi32>
    %160 = arith.andi %157, %159 : vector<1x16xi1>
    %161 = arith.extui %160 : vector<1x16xi1> to vector<1x16xi32>
    %162 = arith.sitofp %161 : vector<1x16xi32> to vector<1x16xf32>
    %163 = arith.truncf %5 : vector<8x16xf32> to vector<8x16xbf16>
    %164 = vector.broadcast %162 : vector<1x16xf32> to vector<4x16xf32>
    %165 = arith.mulf %49, %164 : vector<4x16xf32>
    %166 = arith.truncf %165 : vector<4x16xf32> to vector<4x16xbf16>
    %cst_62 = arith.constant dense<0.000000e+00> : vector<8x4xf32>
    %167 = tpu.matmul %163, %166, %cst_62 {dimension_numbers = #tpu.dot_dimension_numbers<[1], [1], [0], [0], [0, 0, 1, 0], [], []>} : vector<8x16xbf16>, vector<4x16xbf16>, vector<8x4xf32> -> vector<8x4xf32>
    %cst_63 = arith.constant 5.000000e-01 : f32
    %168 = vector.broadcast %cst_63 : f32 to vector<8x4xf32>
    %169 = arith.mulf %167, %168 : vector<8x4xf32>
    %cst_64 = arith.constant dense<0xFF800000> : vector<8xf32>
    %170 = vector.multi_reduction <maximumf>, %169, %cst_64 [1] : vector<8x4xf32> to vector<8xf32>
    %171 = vector.shape_cast %170 : vector<8xf32> to vector<8x1xf32>
    %172 = vector.broadcast %171 : vector<8x1xf32> to vector<8x4xf32>
    %173 = arith.subf %169, %172 : vector<8x4xf32>
    %174 = math.exp %173 : vector<8x4xf32>
    %cst_65 = arith.constant dense<0.000000e+00> : vector<8xf32>
    %175 = vector.multi_reduction <add>, %174, %cst_65 [1] : vector<8x4xf32> to vector<8xf32>
    %176 = vector.shape_cast %175 : vector<8xf32> to vector<8x1xf32>
    %177 = tpu.reciprocal %176 {approx = true} : vector<8x1xf32> -> vector<8x1xf32>
    %178 = vector.broadcast %177 : vector<8x1xf32> to vector<8x4xf32>
    %179 = arith.mulf %174, %178 : vector<8x4xf32>
    %180 = arith.truncf %179 : vector<8x4xf32> to vector<8x4xbf16>
    %181 = vector.broadcast %162 : vector<1x16xf32> to vector<4x16xf32>
    %182 = arith.mulf %93, %181 : vector<4x16xf32>
    %183 = arith.truncf %182 : vector<4x16xf32> to vector<4x16xbf16>
    %cst_66 = arith.constant dense<0.000000e+00> : vector<8x16xf32>
    %184 = tpu.matmul %180, %183, %cst_66 {dimension_numbers = #tpu.dot_dimension_numbers<[1], [0], [0], [1], [0, 0, 1, 1], [], []>} : vector<8x4xbf16>, vector<4x16xbf16>, vector<8x16xf32> -> vector<8x16xf32>
    %185 = arith.addf %155, %184 : vector<8x16xf32>
    %c12_i32_67 = arith.constant 12 : i32
    %186 = vector.broadcast %c12_i32_67 : i32 to vector<1x16xi32>
    %187 = arith.cmpi sge, %94, %186 : vector<1x16xi32>
    %c16_i32 = arith.constant 16 : i32
    %188 = vector.broadcast %c16_i32 : i32 to vector<1x16xi32>
    %189 = arith.cmpi slt, %94, %188 : vector<1x16xi32>
    %190 = arith.andi %187, %189 : vector<1x16xi1>
    %191 = arith.extui %190 : vector<1x16xi1> to vector<1x16xi32>
    %192 = arith.sitofp %191 : vector<1x16xi32> to vector<1x16xf32>
    %193 = arith.truncf %5 : vector<8x16xf32> to vector<8x16xbf16>
    %194 = vector.broadcast %192 : vector<1x16xf32> to vector<4x16xf32>
    %195 = arith.mulf %49, %194 : vector<4x16xf32>
    %196 = arith.truncf %195 : vector<4x16xf32> to vector<4x16xbf16>
    %cst_68 = arith.constant dense<0.000000e+00> : vector<8x4xf32>
    %197 = tpu.matmul %193, %196, %cst_68 {dimension_numbers = #tpu.dot_dimension_numbers<[1], [1], [0], [0], [0, 0, 1, 0], [], []>} : vector<8x16xbf16>, vector<4x16xbf16>, vector<8x4xf32> -> vector<8x4xf32>
    %cst_69 = arith.constant 5.000000e-01 : f32
    %198 = vector.broadcast %cst_69 : f32 to vector<8x4xf32>
    %199 = arith.mulf %197, %198 : vector<8x4xf32>
    %cst_70 = arith.constant dense<0xFF800000> : vector<8xf32>
    %200 = vector.multi_reduction <maximumf>, %199, %cst_70 [1] : vector<8x4xf32> to vector<8xf32>
    %201 = vector.shape_cast %200 : vector<8xf32> to vector<8x1xf32>
    %202 = vector.broadcast %201 : vector<8x1xf32> to vector<8x4xf32>
    %203 = arith.subf %199, %202 : vector<8x4xf32>
    %204 = math.exp %203 : vector<8x4xf32>
    %cst_71 = arith.constant dense<0.000000e+00> : vector<8xf32>
    %205 = vector.multi_reduction <add>, %204, %cst_71 [1] : vector<8x4xf32> to vector<8xf32>
    %206 = vector.shape_cast %205 : vector<8xf32> to vector<8x1xf32>
    %207 = tpu.reciprocal %206 {approx = true} : vector<8x1xf32> -> vector<8x1xf32>
    %208 = vector.broadcast %207 : vector<8x1xf32> to vector<8x4xf32>
    %209 = arith.mulf %204, %208 : vector<8x4xf32>
    %210 = arith.truncf %209 : vector<8x4xf32> to vector<8x4xbf16>
    %211 = vector.broadcast %192 : vector<1x16xf32> to vector<4x16xf32>
    %212 = arith.mulf %93, %211 : vector<4x16xf32>
    %213 = arith.truncf %212 : vector<4x16xf32> to vector<4x16xbf16>
    %cst_72 = arith.constant dense<0.000000e+00> : vector<8x16xf32>
    %214 = tpu.matmul %210, %213, %cst_72 {dimension_numbers = #tpu.dot_dimension_numbers<[1], [0], [0], [1], [0, 0, 1, 1], [], []>} : vector<8x4xbf16>, vector<4x16xbf16>, vector<8x16xf32> -> vector<8x16xf32>
    %215 = arith.addf %185, %214 : vector<8x16xf32>
    %c0_73 = arith.constant 0 : index
    %c0_74 = arith.constant 0 : index
    %216 = vector.load %arg9[%c0_73, %c0_74] : memref<16x16xf32, #tpu.memory_space<vmem>>, vector<16x16xf32>
    %217 = arith.truncf %215 : vector<8x16xf32> to vector<8x16xbf16>
    %218 = arith.truncf %216 : vector<16x16xf32> to vector<16x16xbf16>
    %cst_75 = arith.constant dense<0.000000e+00> : vector<8x16xf32>
    %219 = tpu.matmul %217, %218, %cst_75 {dimension_numbers = #tpu.dot_dimension_numbers<[1], [0], [0], [1], [0, 0, 1, 1], [], []>} : vector<8x16xbf16>, vector<16x16xbf16>, vector<8x16xf32> -> vector<8x16xf32>
    %c0_76 = arith.constant 0 : index
    %c0_77 = arith.constant 0 : index
    %220 = vector.load %arg10[%c0_76, %c0_77] : memref<1x16xf32, #tpu.memory_space<vmem>>, vector<1x16xf32>
    %221 = vector.broadcast %220 : vector<1x16xf32> to vector<8x16xf32>
    %222 = arith.addf %219, %221 : vector<8x16xf32>
    %223 = arith.addf %1, %222 : vector<8x16xf32>
    %cst_78 = arith.constant dense<0.000000e+00> : vector<8xf32>
    %224 = vector.multi_reduction <add>, %223, %cst_78 [1] : vector<8x16xf32> to vector<8xf32>
    %225 = vector.shape_cast %224 : vector<8xf32> to vector<8x1xf32>
    %cst_79 = arith.constant 1.600000e+01 : f32
    %226 = vector.broadcast %cst_79 : f32 to vector<8x1xf32>
    %227 = arith.divf %225, %226 : vector<8x1xf32>
    %228 = vector.broadcast %227 : vector<8x1xf32> to vector<8x16xf32>
    %229 = arith.subf %223, %228 : vector<8x16xf32>
    %230 = arith.mulf %229, %229 : vector<8x16xf32>
    %cst_80 = arith.constant dense<0.000000e+00> : vector<8xf32>
    %231 = vector.multi_reduction <add>, %230, %cst_80 [1] : vector<8x16xf32> to vector<8xf32>
    %232 = vector.shape_cast %231 : vector<8xf32> to vector<8x1xf32>
    %cst_81 = arith.constant 1.600000e+01 : f32
    %233 = vector.broadcast %cst_81 : f32 to vector<8x1xf32>
    %234 = arith.divf %232, %233 : vector<8x1xf32>
    %235 = vector.broadcast %227 : vector<8x1xf32> to vector<8x16xf32>
    %236 = arith.subf %223, %235 : vector<8x16xf32>
    %cst_82 = arith.constant 9.99999974E-6 : f32
    %237 = vector.broadcast %cst_82 : f32 to vector<8x1xf32>
    %238 = arith.addf %234, %237 : vector<8x1xf32>
    %239 = math.rsqrt %238 : vector<8x1xf32>
    %240 = vector.broadcast %239 : vector<8x1xf32> to vector<8x16xf32>
    %241 = arith.mulf %236, %240 : vector<8x16xf32>
    %c0_83 = arith.constant 0 : index
    %c0_84 = arith.constant 0 : index
    %242 = vector.load %arg11[%c0_83, %c0_84] : memref<2x16xf32, #tpu.memory_space<vmem>>, vector<1x16xf32>
    %243 = vector.broadcast %242 : vector<1x16xf32> to vector<8x16xf32>
    %244 = arith.mulf %241, %243 : vector<8x16xf32>
    %c1_85 = arith.constant 1 : index
    %c0_86 = arith.constant 0 : index
    %245 = vector.load %arg11[%c1_85, %c0_86] : memref<2x16xf32, #tpu.memory_space<vmem>>, vector<1x16xf32>
    %246 = vector.broadcast %245 : vector<1x16xf32> to vector<8x16xf32>
    %247 = arith.addf %244, %246 : vector<8x16xf32>
    %c0_87 = arith.constant 0 : index
    %c0_88 = arith.constant 0 : index
    %c0_89 = arith.constant 0 : index
    %248 = vector.load %arg12[%c0_87, %c0_88, %c0_89] : memref<1x8x16xf32, #tpu.memory_space<vmem>>, vector<1x8x16xf32>
    %249 = vector.shape_cast %248 : vector<1x8x16xf32> to vector<8x16xf32>
    %250 = vector.shape_cast %247 : vector<8x16xf32> to vector<1x8x16xf32>
    tpu.vector_store %arg12[%c0_87, %c0_88, %c0_89], %250 {strides = array<i32>} : memref<1x8x16xf32, #tpu.memory_space<vmem>>, vector<1x8x16xf32>,
    return
  }
  func.func @transform_0(%arg0: i32) -> (i32, i32, i32) {
    %c0_i32 = arith.constant 0 : i32
    %c0_i32_0 = arith.constant 0 : i32
    %c0_i32_1 = arith.constant 0 : i32
    return %arg0, %c0_i32, %c0_i32_0 : i32, i32, i32
  }
  func.func @transform_1(%arg0: i32) -> (i32, i32, i32) {
    %c0_i32 = arith.constant 0 : i32
    %c0_i32_0 = arith.constant 0 : i32
    %c0_i32_1 = arith.constant 0 : i32
    return %arg0, %c0_i32, %c0_i32_0 : i32, i32, i32
  }
  func.func @transform_2(%arg0: i32) -> (i32, i32, i32) {
    %c0_i32 = arith.constant 0 : i32
    %c0_i32_0 = arith.constant 0 : i32
    %c0_i32_1 = arith.constant 0 : i32
    return %arg0, %c0_i32, %c0_i32_0 : i32, i32, i32
  }
  func.func @transform_3(%arg0: i32) -> (i32, i32) {
    %c0_i32 = arith.constant 0 : i32
    %c0_i32_0 = arith.constant 0 : i32
    %c0_i32_1 = arith.constant 0 : i32
    return %c0_i32, %c0_i32_0 : i32, i32
  }
  func.func @transform_4(%arg0: i32) -> (i32, i32, i32) {
    %c0_i32 = arith.constant 0 : i32
    %c0_i32_0 = arith.constant 0 : i32
    %c0_i32_1 = arith.constant 0 : i32
    %c0_i32_2 = arith.constant 0 : i32
    return %c0_i32, %c0_i32_0, %c0_i32_1 : i32, i32, i32
  }
  func.func @transform_5(%arg0: i32) -> (i32, i32) {
    %c0_i32 = arith.constant 0 : i32
    %c0_i32_0 = arith.constant 0 : i32
    %c0_i32_1 = arith.constant 0 : i32
    return %c0_i32, %c0_i32_0 : i32, i32
  }
  func.func @transform_6(%arg0: i32) -> (i32, i32, i32) {
    %c0_i32 = arith.constant 0 : i32
    %c0_i32_0 = arith.constant 0 : i32
    %c0_i32_1 = arith.constant 0 : i32
    %c0_i32_2 = arith.constant 0 : i32
    return %c0_i32, %c0_i32_0, %c0_i32_1 : i32, i32, i32
  }
  func.func @transform_7(%arg0: i32) -> (i32, i32) {
    %c0_i32 = arith.constant 0 : i32
    %c0_i32_0 = arith.constant 0 : i32
    %c0_i32_1 = arith.constant 0 : i32
    return %c0_i32, %c0_i32_0 : i32, i32
  }
  func.func @transform_8(%arg0: i32) -> (i32, i32) {
    %c0_i32 = arith.constant 0 : i32
    %c0_i32_0 = arith.constant 0 : i32
    %c0_i32_1 = arith.constant 0 : i32
    return %c0_i32, %c0_i32_0 : i32, i32
  }
  func.func @transform_9(%arg0: i32) -> (i32, i32) {
    %c0_i32 = arith.constant 0 : i32
    %c0_i32_0 = arith.constant 0 : i32
    %c0_i32_1 = arith.constant 0 : i32
    return %c0_i32, %c0_i32_0 : i32, i32
  }
  func.func @transform_10(%arg0: i32) -> (i32, i32) {
    %c0_i32 = arith.constant 0 : i32
    %c0_i32_0 = arith.constant 0 : i32
    %c0_i32_1 = arith.constant 0 : i32
    return %c0_i32, %c0_i32_0 : i32, i32
  }
  func.func @transform_11(%arg0: i32) -> (i32, i32, i32) {
    %c0_i32 = arith.constant 0 : i32
    %c0_i32_0 = arith.constant 0 : i32
    %c0_i32_1 = arith.constant 0 : i32
    return %arg0, %c0_i32, %c0_i32_0 : i32, i32, i32
  }
}

module attributes {stable_mosaic.version = 11 : i64} {
  func.func @kernel(%arg0: i32, %arg1: memref<1x8x16xf32, #tpu.memory_space<vmem>>, %arg2: memref<1x16xf32, #tpu.memory_space<vmem>>, %arg3: memref<1x16xf32, #tpu.memory_space<vmem>>, %arg4: memref<1x8x16xf32, #tpu.memory_space<vmem>>) attributes {dimension_semantics = [#tpu.dimension_semantics<parallel>], iteration_bounds = array<i64: 2>, scalar_prefetch = 0 : i64, scratch_operands = 0 : i64, tpu.core_type = #tpu.core_type<tc>, window_params = [{transform_indices = @transform_0, window_bounds = array<i64: 1, 8, 16>}, {pipeline_mode = #tpu.pipeline_mode<synchronous>, transform_indices = @transform_1, window_bounds = array<i64: 1, 16>}, {pipeline_mode = #tpu.pipeline_mode<synchronous>, transform_indices = @transform_2, window_bounds = array<i64: 1, 16>}, {transform_indices = @transform_3, window_bounds = array<i64: 1, 8, 16>}]} {
    %c0 = arith.constant 0 : index
    %c0_0 = arith.constant 0 : index
    %c0_1 = arith.constant 0 : index
    %0 = vector.load %arg1[%c0, %c0_0, %c0_1] : memref<1x8x16xf32, #tpu.memory_space<vmem>>, vector<1x8x16xf32>
    %1 = vector.shape_cast %0 : vector<1x8x16xf32> to vector<8x16xf32>
    %cst = arith.constant dense<0.000000e+00> : vector<8xf32>
    %2 = vector.multi_reduction <add>, %1, %cst [1] : vector<8x16xf32> to vector<8xf32>
    %3 = vector.shape_cast %2 : vector<8xf32> to vector<8x1xf32>
    %cst_2 = arith.constant 1.600000e+01 : f32
    %4 = vector.broadcast %cst_2 : f32 to vector<8x1xf32>
    %5 = arith.divf %3, %4 : vector<8x1xf32>
    %6 = vector.broadcast %5 : vector<8x1xf32> to vector<8x16xf32>
    %7 = arith.subf %1, %6 : vector<8x16xf32>
    %8 = arith.mulf %7, %7 : vector<8x16xf32>
    %cst_3 = arith.constant dense<0.000000e+00> : vector<8xf32>
    %9 = vector.multi_reduction <add>, %8, %cst_3 [1] : vector<8x16xf32> to vector<8xf32>
    %10 = vector.shape_cast %9 : vector<8xf32> to vector<8x1xf32>
    %cst_4 = arith.constant 1.600000e+01 : f32
    %11 = vector.broadcast %cst_4 : f32 to vector<8x1xf32>
    %12 = arith.divf %10, %11 : vector<8x1xf32>
    %13 = vector.broadcast %5 : vector<8x1xf32> to vector<8x16xf32>
    %14 = arith.subf %1, %13 : vector<8x16xf32>
    %cst_5 = arith.constant 9.99999974E-6 : f32
    %15 = vector.broadcast %cst_5 : f32 to vector<8x1xf32>
    %16 = arith.addf %12, %15 : vector<8x1xf32>
    %17 = math.rsqrt %16 : vector<8x1xf32>
    %18 = vector.broadcast %17 : vector<8x1xf32> to vector<8x16xf32>
    %19 = arith.mulf %14, %18 : vector<8x16xf32>
    %c0_6 = arith.constant 0 : index
    %c0_7 = arith.constant 0 : index
    %20 = vector.load %arg2[%c0_6, %c0_7] : memref<1x16xf32, #tpu.memory_space<vmem>>, vector<1x16xf32>
    %21 = vector.broadcast %20 : vector<1x16xf32> to vector<8x16xf32>
    %22 = arith.mulf %19, %21 : vector<8x16xf32>
    %c0_8 = arith.constant 0 : index
    %c0_9 = arith.constant 0 : index
    %23 = vector.load %arg3[%c0_8, %c0_9] : memref<1x16xf32, #tpu.memory_space<vmem>>, vector<1x16xf32>
    %24 = vector.broadcast %23 : vector<1x16xf32> to vector<8x16xf32>
    %25 = arith.addf %22, %24 : vector<8x16xf32>
    %c0_10 = arith.constant 0 : index
    %c0_11 = arith.constant 0 : index
    %c0_12 = arith.constant 0 : index
    %26 = vector.load %arg4[%c0_10, %c0_11, %c0_12] : memref<1x8x16xf32, #tpu.memory_space<vmem>>, vector<1x8x16xf32>
    %27 = vector.shape_cast %26 : vector<1x8x16xf32> to vector<8x16xf32>
    %28 = vector.shape_cast %25 : vector<8x16xf32> to vector<1x8x16xf32>
    tpu.vector_store %arg4[%c0_10, %c0_11, %c0_12], %28 {strides = array<i32>} : memref<1x8x16xf32, #tpu.memory_space<vmem>>, vector<1x8x16xf32>,
    return
  }
  func.func @transform_0(%arg0: i32) -> (i32, i32, i32) {
    %c0_i32 = arith.constant 0 : i32
    %c0_i32_0 = arith.constant 0 : i32
    %c0_i32_1 = arith.constant 0 : i32
    return %arg0, %c0_i32, %c0_i32_0 : i32, i32, i32
  }
  func.func @transform_1(%arg0: i32) -> (i32, i32) {
    %c0_i32 = arith.constant 0 : i32
    %c0_i32_0 = arith.constant 0 : i32
    %c0_i32_1 = arith.constant 0 : i32
    return %c0_i32, %c0_i32_0 : i32, i32
  }
  func.func @transform_2(%arg0: i32) -> (i32, i32) {
    %c0_i32 = arith.constant 0 : i32
    %c0_i32_0 = arith.constant 0 : i32
    %c0_i32_1 = arith.constant 0 : i32
    return %c0_i32, %c0_i32_0 : i32, i32
  }
  func.func @transform_3(%arg0: i32) -> (i32, i32, i32) {
    %c0_i32 = arith.constant 0 : i32
    %c0_i32_0 = arith.constant 0 : i32
    %c0_i32_1 = arith.constant 0 : i32
    return %arg0, %c0_i32, %c0_i32_0 : i32, i32, i32
  }
}

</mosaic_0001>

<bundles_post_ra>
// kernel: convformer_forward_pallas.6
= control target key start
LH: loop header
LB: loop body
LE: loop exit
PB: predicated region body
PF: predicated region fallthrough
CT: control target
= control target key end

     0   :  { %s708_s18 = smov 0   ;;  %s795_s0 = inlined_call_operand.vmem [shape: f32[2,16,8], index: 0, kind: input, shape index: {}]   ;;  %s796_s1 = inlined_call_operand.vmem [shape: f32[3,16,64], index: 1, kind: input, shape index: {}]   ;;  %s797_s2 = inlined_call_operand.vmem [shape: f32[1,64], index: 2, kind: input, shape index: {}]   ;;  %s798_s3 = inlined_call_operand.vmem [shape: f32[1,64,16], index: 3, kind: input, shape index: {}]   ;;  %s799_s4 = inlined_call_operand.vmem [shape: f32[1,16], index: 4, kind: input, shape index: {}]   ;;  %s800_s5 = inlined_call_operand.vmem [shape: f32[2,16,8], index: 5, kind: output, shape index: {}]  }
   0x1 LB: > { %s594_s19 = sadd.s32 4294967295, %s674_s18   ;;  %p598_p0 = scmp.ge.s32.totalorder %s674_s18, 1  ;;  %s674_s18 = sphi %s708_s18, %s15_s18  }
   0x2   : > { %p187_p1 = scmp.lt.s32.totalorder %s674_s18, 3 }
   0x4   : > { %p188_p2 = pnand %p598_p0, %p187_p1 }
   0x5   : > { %p215_p3 = scmp.lt.s32.totalorder (!%p188_p2), %s594_s19, 1 }
   0x6   : > { %191 = sbr.rel (%p188_p2) target bundleno = 705 (0x2c1), region = 40 }
   0xb   : > { %s802_s19 = smov (!%p215_p3, %s594_s19), 1  ;;  %v267_v0 = vld [vmem:[%s796_s1] sm:$0xff]  ;;  %v268_v1 = vld [vmem:[%s796_s1 + $0x8] sm:$0xff]  ;;  %v676_v3 = vmov 0.0   ;;  %vm677_vm0 = vmmov 0   ;;  %v603_v6 = vld [vmem:[%s796_s1 + $0x10] sm:$0xff] }
   0xc   : > { %s615_s24 = sshll.u32 %s802_s19, 4  ;;  %v269_v2 = vpack.c.bf16 %v268_v1, %v267_v0  ;;  %634 = vmatprep.subr.bf16.mxu1 %v676_v3  ;;  %628 = vmatprep.subr.bf16.mxu0 %v676_v3  ;;  %v604_v7 = vld [vmem:[%s796_s1 + $0x18] sm:$0xff]  ;;  %vm263_vm1 = vcmask 1040384   ;;  %vm282_vm2 = vcmask 130048   ;;  %v607_v16 = vld [vmem:[%s796_s1 + $0x20] sm:$0xff]  ;;  %v608_v17 = vld [vmem:[%s796_s1 + $0x28] sm:$0xff] }
   0xd   : > { %s219_s27 = scalar_lea.vmem %s795_s0, %s615_s24  ;;  %636 = vmatprep.mubr.msk.bf16.mxu1 %vm677_vm0, %v676_v3  ;;  %630 = vmatprep.mubr.msk.bf16.mxu0 %vm677_vm0, %v676_v3  ;;  %v274_v8 = vpack.c.bf16 %v604_v7, %v603_v6  ;;  %v372_v20 = vpack.c.bf16 %v608_v17, %v607_v16  ;;  %v440_v23 = vld [vmem:[%s798_s3 + $0x30] sm:$0xff]  ;;  %v441_v24 = vld [vmem:[%s798_s3 + $0x38] sm:$0xff]  ;;  %v438_v26 = vld [vmem:[%s798_s3 + $0x20] sm:$0xff]  ;;  %vm453_vm3 = vcmask 523264   ;;  %s224_s11 = scalar_lea.vmem %s800_s5, %s615_s24  ;;  %vm536_vm4 = vcmask 64512  }
   0xe   : > { %v730_v4 = vld [vmem:[%s219_s27] sm:$0xff]  ;;  %635 = vmatpush3.bf16.msra.mxu1 %v269_v2  ;;  %v733_v5 = vld [vmem:[%s219_s27 + $0x8] sm:$0xff]  ;;  %v445_v25 = vpack.c.bf16 %v441_v24, %v440_v23  ;;  %v436_v29 = vld [vmem:[%s798_s3 + $0x10] sm:$0xff] }
   0xf   : > { %228 = vxpose.xlu0.b32.start [1/2] (short) (narrow) %v730_v4, 8  ;;  %646 = vmatprep.subr.bf16.mxu1 %v676_v3  ;;  %v439_v27 = vld [vmem:[%s798_s3 + $0x28] sm:$0xff]  ;;  %v437_v30 = vld [vmem:[%s798_s3 + $0x18] sm:$0xff]  ;;  %v434_v32 = vld [vmem:[%s798_s3] sm:$0xff] }
  0x10   : > { %629 = vmatpush3.bf16.msra.mxu0 %v274_v8  ;;  %v444_v28 = vpack.c.bf16 %v439_v27, %v438_v26  ;;  %v443_v31 = vpack.c.bf16 %v437_v30, %v436_v29  ;;  %v435_v33 = vld [vmem:[%s798_s3 + $0x8] sm:$0xff]  ;;  %v610_v45 = vld [vmem:[%s797_s2] ss:$0 sm:$0xff] }
  0x11   : > { %640 = vmatprep.subr.bf16.mxu0 %v676_v3  ;;  %v442_v34 = vpack.c.bf16 %v435_v33, %v434_v32  ;;  %v611_v57 = vld [vmem:[%s799_s4] ss:$0 sm:$0xff] }
  0x13   : > { %229 = vxpose.xlu0.b32.end [2/2] (short) (narrow) %v733_v5, 8 }
  0x8b   : > { %v244_v9 = vpop.trf.xlu0 }
  0x8c   : > { %v261_v10 = vrot.slane %v244_v9, 7 }
  0x8e   : > { %v264_v11 = vsel %vm263_vm1, 0.0, %v261_v10  ;;  %v265_v12 = vsel %vm263_vm1, %v261_v10, 0.0 }
  0x8f   : > { %v266_v13 = vpack.c.bf16 %v264_v11, %v264_v11  ;;  %v270_v14 = vpack.c.bf16 %v265_v12, %v264_v11 }
  0x91   : > { %v278_v15 = vshll.u32 %v270_v14, 16  ;;  %637 = vmatmul.mubr.msk.bf16.vlgmr.msra.gmra.mxu1 %vm282_vm2, %v266_v13  ;;  %v276_v18 = vshrl.u32 %v270_v14, 16  ;;  %v374_v22 = vrot.slane %v270_v14, 1 }
  0x92   : > { %654 = vmatprep.mubr.msk.bf16.mxu1 %vm677_vm0, %v676_v3  ;;  %647 = vmatpush3.bf16.msra.mxu1 %v445_v25 }
  0x93   : > { %v280_v19 = vrot.slane %v278_v15, 1  ;;  %648 = vmatprep.subr.bf16.mxu1 %v676_v3 }
  0x95   : > { %v281_v21 = vor.u32 %v280_v19, %v276_v18 }
  0x96   : > { %649 = vmatpush3.bf16.msra.mxu1 %v444_v28 }
  0x97   : > { %631 = vmatmul.mubr.msk.bf16.vlgmr.msra.gmra.mxu0 %vm282_vm2, %v281_v21  ;;  %650 = vmatprep.subr.bf16.mxu1 %v676_v3 }
  0x98   : > { %641 = vmatpush3.bf16.msra.mxu0 %v372_v20  ;;  %642 = vmatprep.mubr.msk.bf16.mxu0 %vm677_vm0, %v676_v3 }
  0x9a   : > { %651 = vmatpush3.bf16.msra.mxu1 %v443_v31 }
  0x9b   : > { %652 = vmatprep.subr.bf16.mxu1 %v676_v3 }
  0x9e   : > { %653 = vmatpush3.bf16.msra.mxu1 %v442_v34 }
  0x9f   : > { %643 = vmatmul.mubr.msk.bf16.vlgmr.msra.gmra.mxu0 %vm282_vm2, %v374_v22 }
 0x151   : > { %v363_v35 = vpop.f32.mrf.mxu1 }
 0x153   : > { %v638_v36 = vpop.f32.mrf.mxu1 }
 0x155   : > { %v366_v37 = vpop.f32.mrf.mxu1 }
 0x157   : > { %v320_v38 = vpop.f32.mrf.mxu0  ;;  %v639_v39 = vpop.f32.mrf.mxu1 }
 0x158   : > { %v364_v43 = vadd.f32 %v363_v35, %v320_v38 }
 0x159   : > { %v632_v40 = vpop.f32.mrf.mxu0 }
 0x15b   : > { %v323_v41 = vpop.f32.mrf.mxu0 }
 0x15d   : > { %v633_v42 = vpop.f32.mrf.mxu0 }
 0x15f   : > { %v412_v44 = vpop.f32.mrf.mxu0 }
 0x160   : > { %v418_v46 = vadd.f32 %v412_v44, %v364_v43 }
 0x161   : > { %v644_v47 = vpop.f32.mrf.mxu0 }
 0x162   : > { %v426_v48 = vadd.f32 %v610_v45, %v418_v46 }
 0x163   : > { %v415_v49 = vpop.f32.mrf.mxu0 }
 0x164   : > { %v427_v50 = vadd.f32 3.0, %v426_v48 }
 0x165   : > { %v645_v51 = vpop.f32.mrf.mxu0 }
 0x166   : > { %v428_v52 = vmax.f32 %v427_v50, 0.0 }
 0x168   : > { %v429_v53 = vmin.f32 %v428_v52, 6.0 }
 0x16a   : > { %v430_v54 = vmul.f32 %v429_v53, %v426_v48 }
 0x16c   : > { %v432_v55 = vmul.f32 0.16666667, %v430_v54 }
 0x16e   : > { %v433_v56 = vpack.c.bf16 %v432_v55, %v432_v55 }
 0x170   : > { %655 = vmatmul.mubr.msk.bf16.vlgmr.msra.gmra.mxu1 %vm453_vm3, %v433_v56 }
 0x230   : > { %v491_v58 = vpop.f32.mrf.mxu1 }
 0x231   : > { %v492_v59 = vadd.f32 %v611_v57, %v491_v58 }
 0x232   : > { %v656_v60 = vpop.f32.mrf.mxu1 }
 0x233   : > { %v497_v61 = vadd.f32 3.0, %v492_v59 }
 0x234   : > { %v494_v62 = vpop.f32.mrf.mxu1 }
 0x235   : > { %v498_v63 = vmax.f32 %v497_v61, 0.0 }
 0x236   : > { %v657_v0 = vpop.f32.mrf.mxu1 }
 0x237   : > { %v499_v1 = vmin.f32 %v498_v63, 6.0 }
 0x239   : > { %v500_v2 = vmul.f32 %v499_v1, %v492_v59 }
 0x23b   : > { %v501_v3 = vmul.f32 0.16666667, %v500_v2 }
 0x23d   : > { %502 = vxpose.xlu1.b32.start.end [1/1] (short) (narrow) %v501_v3, 16 }
 0x2b9   : > { %v518_v6 = vpop.trf.xlu1 }
 0x2ba   : > { %v534_v7 = vadd.f32 %v518_v6, %v730_v4 }
 0x2bc   : > { %537 = vst.msk [vmem:[%s224_s11] sm:$0xff] %vm536_vm4, %v534_v7 }
 0x2bd   : > { %v519_v8 = vpop.trf.xlu1 }
 0x2be   : > { %v535_v9 = vadd.f32 %v519_v8, %v733_v5 }
 0x2c0   : > { %538 = vst.msk [vmem:[%s224_s11 + $0x8] sm:$0xff] %vm536_vm4, %v535_v9 }
 0x2c1 PF: > { %s15_s18 = sadd.s32 1, %s674_s18  }
 0x2c2   : > { %p12_p4 = scmp.ge.s32.totalorder %s15_s18, 4  }
 0x2c4   :  { %14 = sbr.rel (!%p12_p4) target bundleno = 1 (0x1), region = 72 }

// kernel: convformer_forward_pallas.7
= control target key start
LH: loop header
LB: loop body
LE: loop exit
PB: predicated region body
PF: predicated region fallthrough
CT: control target
= control target key end

     0   :  { %s301_s12 = smov 0   ;;  %s327_s0 = inlined_call_operand.vmem [shape: f32[2,8,16], index: 0, kind: input, shape index: {}]   ;;  %s328_s1 = inlined_call_operand.vmem [shape: f32[1,16], index: 1, kind: input, shape index: {}]   ;;  %s329_s2 = inlined_call_operand.vmem [shape: f32[1,16], index: 2, kind: input, shape index: {}]   ;;  %s330_s3 = inlined_call_operand.vmem [shape: f32[2,8,16], index: 3, kind: output, shape index: {}]  }
   0x1 LB: > { %s252_s13 = sadd.s32 4294967295, %s279_s12   ;;  %p256_p0 = scmp.ge.s32.totalorder %s279_s12, 1  ;;  %s279_s12 = sphi %s301_s12, %s13_s12  }
   0x2   : > { %p136_p1 = scmp.lt.s32.totalorder %s279_s12, 3 }
   0x4   : > { %p137_p2 = pnand %p256_p0, %p136_p1 }
   0x5   : > { %p158_p3 = scmp.lt.s32.totalorder (!%p137_p2), %s252_s13, 1 }
   0x6   : > { %140 = sbr.rel (%p137_p2) target bundleno = 324 (0x144), region = 32 }
   0xb   : > { %s332_s13 = smov (!%p158_p3, %s252_s13), 1  ;;  %vm167_vm0 = vcmask 130048   ;;  %v259_v11 = vld [vmem:[%s328_s1] ss:$0 sm:$0xff] }
   0xc   : > { %s257_s14 = sshll.u32 %s332_s13, 3  ;;  %v260_v13 = vld [vmem:[%s329_s2] ss:$0 sm:$0xff] }
   0xd   : > { %s161_s17 = scalar_lea.vmem %s327_s0, %s257_s14  ;;  %s165_s24 = scalar_lea.vmem %s330_s3, %s257_s14 }
   0xe   : > { %v166_v0 = vld [vmem:[%s161_s17] sm:$0xff] }
   0xf   : > { %v168_v1 = vsel %vm167_vm0, %v166_v0, 0.0 }
  0x10   : > { %169 = vadd.xlane.f32.xlu0 %v168_v1 }
  0x99   : > { %v170_v2 = vpop.xlane.xlu0 %169 }
  0x9a   : > { %v172_v3 = vmul.f32 0.0625, %v170_v2 }
  0x9c   : > { %v173_v4 = vsub.f32 %v166_v0, %v172_v3 }
  0x9e   : > { %v174_v5 = vmul.f32 %v173_v4, %v173_v4 }
  0xa0   : > { %v175_v6 = vsel %vm167_vm0, %v174_v5, 0.0 }
  0xa1   : > { %176 = vadd.xlane.f32.xlu0 %v175_v6 }
 0x12a   : > { %v177_v7 = vpop.xlane.xlu0 %176 }
 0x12b   : > { %v178_v8 = vmul.f32 0.0625, %v177_v7 }
 0x12d   : > { %v179_v9 = vadd.f32 1e-05, %v178_v8 }
 0x12f   : > { %271 = vrsqrt.f32 %v179_v9 }
 0x13c   : > { %v272_v10 = vpop.eup %271 }
 0x13d   : > { %v181_v12 = vmul.f32 %v272_v10, %v173_v4 }
 0x13f   : > { %v189_v14 = vmul.f32 %v259_v11, %v181_v12 }
 0x141   : > { %v197_v15 = vadd.f32 %v260_v13, %v189_v14 }
 0x143   : > { %198 = vst.msk [vmem:[%s165_s24] sm:$0xff] %vm167_vm0, %v197_v15 }
 0x144 PF: > { %s13_s12 = sadd.s32 1, %s279_s12  }
 0x145   : > { %p10_p4 = scmp.ge.s32.totalorder %s13_s12, 4  }
 0x147   :  { %12 = sbr.rel (!%p10_p4) target bundleno = 1 (0x1), region = 62 }

// kernel: convformer_forward_pallas.4
= control target key start
LH: loop header
LB: loop body
LE: loop exit
PB: predicated region body
PF: predicated region fallthrough
CT: control target
= control target key end

     0   :  { %s2259_s0 = inlined_call_operand.hbm [shape: f32[2,16,16], index: 0, kind: input, shape index: {}]   ;;  %s2260_s1 = inlined_call_operand.hbm [shape: f32[3,16,16], index: 1, kind: input, shape index: {}]   ;;  %s2261_s2 = inlined_call_operand.hbm [shape: f32[3,16], index: 2, kind: input, shape index: {}]   ;;  %s2262_s3 = inlined_call_operand.hbm [shape: f32[3,16,32], index: 3, kind: input, shape index: {}]   ;;  %s2263_s4 = inlined_call_operand.hbm [shape: f32[3,32], index: 4, kind: input, shape index: {}]   ;;  %s2264_s5 = inlined_call_operand.hbm [shape: f32[3,32,16], index: 5, kind: input, shape index: {}]   ;;  %s2265_s6 = inlined_call_operand.vmem [shape: f32[3,16], index: 6, kind: input, shape index: {}]   ;;  %s2266_s7 = inlined_call_operand.vmem [shape: f32[16,16], index: 7, kind: input, shape index: {}]   ;;  %s2267_s8 = inlined_call_operand.vmem [shape: f32[16,16], index: 8, kind: input, shape index: {}]   ;;  %s2268_s9 = inlined_call_operand.vmem [shape: f32[2,8,16], index: 9, kind: output, shape index: {0}]   ;;  %s2269_s10 = inlined_call_operand.vmem [shape: f32[2,8,16], index: 10, kind: output, shape index: {1}]   ;;  %s2270_s11 = inlined_call_operand.vmem [shape: f32[2,8,16], index: 11, kind: output, shape index: {2}]  }
   0x1   :  { %2276 = sst [smem:[#allocation16_spill]] %s2260_s1 }
   0x2   :  { %17 = vsyncpa [#allocation3], 0 }
   0x3   :  { %19 = vsyncpa [#allocation3 + $0x1], 0 }
   0x4   :  { %20 = vsyncpa [#allocation5], 0 }
   0x5   :  { %21 = vsyncpa [#allocation8], 0 }
   0x6   :  { %22 = vsyncpa [#allocation11], 0  ;;  %s1972_s17 = smov 0   ;;  %s1974_s18 = smov 0  }
   0x7   :  { %s1976_s19 = smov 0   ;;  %s1978_s20 = smov 0  }
   0x8 LB: > { %s1902_s21 = smov [#allocation4]   ;;  %s1993_s23 = sadd.s32 4294967295, %s1900_s20   ;;  %s1900_s20 = sphi %s1978_s20, %s2297_s20   ;;  %s1896_s19 = sphi %s1976_s19, %s2296_s19   ;;  %s1892_s18 = sphi %s1974_s18, %s2295_s18   ;;  %s1888_s17 = sphi %s1972_s17, %s2294_s17  }
   0x9   : > { %s317_s22 = sshll.u32 %s1902_s21, 4  ;;  %p1450_p0 = scmp.ge.s32.totalorder %s1900_s20, 1  ;;  %s318_s22 = int_to_ptr.vmem [resolvable:$true] %s317_s22 }
   0xa   : > { %p2271_p1 = scmp.eq.s32.totalorder %s1993_s23, 0  ;;  %p305_p2 = scmp.lt.s32.totalorder %s1900_s20, 3 }
   0xb   : > { %s1903_s25 = smov [#allocation7]   ;;  %s1904_s28 = smov [#allocation6]  }
   0xc   : > { %p1998_p3 = pnand %p1450_p0, %p305_p2  ;;  %s341_s26 = sshll.u32 %s1903_s25, 4  ;;  %s2010_s26 = int_to_ptr.vmem [resolvable:$true] %s341_s26 }
   0xd   : > { %s331_s29 = sshll.u32 %s1904_s28, 4  ;;  %s1707_s12 = scalar_lea.vmem %s318_s22, 768  ;;  %s2012_s29 = int_to_ptr.vmem [resolvable:$true] %s331_s29 }
   0xe   : > { %s2277_s24 = scalar_select %p1998_p3, 1, 0 }
   0xf   : > { %p1624_p4 = pneg %p1998_p3  ;;  %p1708_p7 = scmp.ne.s32.totalorder %s318_s22, %s1707_s12 }
  0x10   : > { %p1715_p10 = scmp.lt.s32.totalorder %s318_s22, %s318_s22  ;;  %p1716_p11 = scmp.lt.s32.totalorder %s1707_s12, %s1707_s12 }
  0x11   : > { %p2006_p5 = pnand %p1624_p4, %p2271_p1 }
  0x12   : > { %p1717_p12 = por %p1716_p11, %p1715_p10 }
  0x13   : > { %p2016_p6 = pneg %p2006_p5 }
  0x15   : > { %p1710_p8 = pnand %p1708_p7, %p2016_p6 }
  0x17   : > { %p1711_p9 = pneg %p1710_p8 }
  0x19   : > { %p1718_p13 = pnand %p1717_p12, %p1711_p9 }
  0x1b   : > { %1721 = shalt.err (!%p1718_p13)
}
  0x1c   : > { %s2273_s13 = smov 128   ;;  %s2274_s14 = smov 8  }
  0x1d   : > { %s2280_s1 = sld [smem:[#allocation16_spill]]  ;;  %s1733_s21 = scalar_lea.vmem %s2010_s26, 768 }
  0x1e   : > { %p1734_p0 = scmp.ne.s32.totalorder %s2010_s26, %s1733_s21  ;;  %p1741_p7 = scmp.lt.s32.totalorder %s2010_s26, %s2010_s26 }
  0x1f   : > { %p1742_p8 = scmp.lt.s32.totalorder %s1733_s21, %s1733_s21 }
  0x20   : > { %p1736_p2 = pnand %p1734_p0, %p2016_p6 }
  0x21   : > { %p1743_p9 = por %p1742_p8, %p1741_p7 }
  0x22   : > { %p1737_p4 = pneg %p1736_p2 }
  0x23   : > { %1627 = dma.hbm_to_vmem [thread:$0]  (!%p2006_p5), %s2280_s1, 768, %s318_s22, [#allocation5], %s2273_s13, %s2273_s13, %s2274_s14  }
  0x24   : > { %p1744_p10 = pnand %p1743_p9, %p1737_p4 }
  0x26   : > { %1747 = shalt.err (!%p1744_p10)
}
  0x27   : > { %1633 = dma.hbm_to_vmem [thread:$0]  (!%p2006_p5), %s2262_s3, 768, %s2010_s26, [#allocation8], %s2273_s13, %s2273_s13, %s2274_s14  }
  0x28   : > { %s1759_s22 = scalar_lea.vmem %s2012_s29, 64  ;;  %p1767_p0 = scmp.lt.s32.totalorder %s2012_s29, %s2012_s29 }
  0x29   : > { %p1760_p11 = scmp.ne.s32.totalorder %s2012_s29, %s1759_s22  ;;  %p1768_p2 = scmp.lt.s32.totalorder %s1759_s22, %s1759_s22 }
  0x2b   : > { %p1762_p12 = pnand %p1760_p11, %p2016_p6  ;;  %p1769_p4 = por %p1768_p2, %p1767_p0 }
  0x2d   : > { %p1763_p13 = pneg %p1762_p12 }
  0x2f   : > { %p1770_p7 = pnand %p1769_p4, %p1763_p13 }
  0x31   : > { %1773 = shalt.err (!%p1770_p7)
}
  0x32   : > { %1630 = dma.hbm_to_vmem [thread:$0]  (!%p2006_p5), %s2261_s2, 64, %s2012_s29, [#allocation5]  }
  0x33   : > { %s1907_s26 = smov [#allocation9]   ;;  %s1908_s21 = smov [#allocation10]  }
  0x34   : > { %s355_s16 = sshll.u32 %s1907_s26, 4  ;;  %s365_s25 = sshll.u32 %s1908_s21, 4  ;;  %s356_s16 = int_to_ptr.vmem [resolvable:$true] %s355_s16  ;;  %s366_s25 = int_to_ptr.vmem [resolvable:$true] %s365_s25 }
  0x35   : > { %s1785_s28 = scalar_lea.vmem %s356_s16, 64  ;;  %p1793_p11 = scmp.lt.s32.totalorder %s356_s16, %s356_s16 }
  0x36   : > { %p1786_p8 = scmp.ne.s32.totalorder %s356_s16, %s1785_s28  ;;  %p1794_p12 = scmp.lt.s32.totalorder %s1785_s28, %s1785_s28 }
  0x38   : > { %p1788_p9 = pnand %p1786_p8, %p2016_p6  ;;  %p1795_p13 = por %p1794_p12, %p1793_p11 }
  0x3a   : > { %p1789_p10 = pneg %p1788_p9 }
  0x3c   : > { %p1796_p0 = pnand %p1795_p13, %p1789_p10 }
  0x3e   : > { %1799 = shalt.err (!%p1796_p0)
}
  0x3f   : > { %1636 = dma.hbm_to_vmem [thread:$0]  (!%p2006_p5), %s2263_s4, 64, %s356_s16, [#allocation8]  }
  0x40   : > { %s1811_s29 = scalar_lea.vmem %s366_s25, 1536  ;;  %p1819_p8 = scmp.lt.s32.totalorder %s366_s25, %s366_s25 }
  0x41   : > { %p1812_p2 = scmp.ne.s32.totalorder %s366_s25, %s1811_s29  ;;  %p1820_p9 = scmp.lt.s32.totalorder %s1811_s29, %s1811_s29 }
  0x43   : > { %p1814_p4 = pnand %p1812_p2, %p2016_p6  ;;  %p1821_p1 = por %p1820_p9, %p1819_p8 }
  0x45   : > { %p1815_p7 = pneg %p1814_p4 }
  0x47   : > { %p1822_p3 = pnand %p1821_p1, %p1815_p7 }
  0x49   : > { %1825 = shalt.err (!%p1822_p3)
}
  0x4a   : > { %1639 = dma.hbm_to_vmem [thread:$0]  (!%p2006_p5), %s2264_s5, 1536, %s366_s25, [#allocation11], %s2273_s13, %s2273_s13, %s2274_s14  }
  0x4b   : > { %s2075_s27 = sadd.s32 1, %s1900_s20   ;;  %s35_s16 = sadd.s32 1, %s1896_s19 }
  0x4c   : > { %s32_s30 = ssub.s32 %s1900_s20, %s2075_s27  ;;  %p42_p3 = scmp.ne.s32.totalorder %s1896_s19, %s1892_s18 }
  0x4d   : > { %p33_p1 = scmp.eq.s32.totalorder %s32_s30, 0  ;;  %p43_p6 = scmp.eq.s32.totalorder %s1900_s20, 0 }
  0x4e   : > { %p48_p10 = scmp.ne.s32.totalorder %s1892_s18, %s1888_s17  ;;  %p2281_p12 = scmp.eq.s32.totalorder %s1993_s23, 0 }
  0x4f   : > { %s2086_s21 = scalar_select %p33_p1, %s1896_s19, %s35_s16  }
  0x50   : > { %p44_p11 = por %p43_p6, %p42_p3  ;;  %p2090_p13 = por %p2281_p12, %p48_p10 }
  0x51   : > { %p1649_p0 = scmp.lt.s32.totalorder %s1900_s20, 2  ;;  %s388_s22 = sand.u32 1, %s1896_s19  }
  0x52   : > { %s2282_s28 = scalar_select %p2090_p13, 1, 0 }
  0x53   : > { %s1457_s25 = sshll.u32 %s388_s22, 4  ;;  %s1494_s12 = sshll.u32 %s1900_s20, 8 }
  0x54   : > { %s2100_s26 = scalar_lea.hbm %s2259_s0, %s1494_s12  ;;  %s392_s17 = scalar_lea.vmem [#allocation2], %s1457_s25 }
  0x55   : > { %s399_s30 = sshll.u32 %s392_s17, 4  ;;  %p2104_p5 = pnand %p1649_p0, %p44_p11  ;;  %s2102_s30 = int_to_ptr.vmem [resolvable:$true] %s399_s30 }
  0x56   : > { %s2108_s13 = scalar_lea.sflag [#allocation3], %s388_s22  ;;  %s1826_s20 = scalar_lea.hbm %s2100_s26, 256 }
  0x57   : > { %p1827_p2 = scmp.ne.s32.totalorder %s2100_s26, %s1826_s20  ;;  %p1828_p4 = pneg %p2104_p5 }
  0x58   : > { %s1831_s25 = scalar_lea.hbm %s2259_s0, 512  ;;  %p1832_p9 = scmp.lt.s32.totalorder %s2100_s26, %s2259_s0 }
  0x59   : > { %p1829_p7 = pnand %p1828_p4, %p1827_p2  ;;  %p1833_p1 = scmp.lt.s32.totalorder %s1831_s25, %s1826_s20 }
  0x5b   : > { %p1830_p8 = pneg %p1829_p7  ;;  %p1834_p3 = por %p1833_p1, %p1832_p9 }
  0x5d   : > { %p1835_p6 = pnand %p1834_p3, %p1830_p8 }
  0x5f   : > { %1838 = shalt.err (!%p1835_p6)
}
  0x60   : > { %s1839_s22 = scalar_lea.vmem %s2102_s30, 256  ;;  %s1909_s14 = smov [#allocation2]  }
  0x61   : > { %p1840_p10 = scmp.ne.s32.totalorder %s2102_s30, %s1839_s22  ;;  %s1844_s1 = sshll.u32 %s1909_s14, 4  ;;  %s1845_s1 = int_to_ptr.vmem [resolvable:$false] %s1844_s1 }
  0x62   : > { %s1846_s12 = scalar_lea.vmem %s1845_s1, 512  ;;  %p1847_p0 = scmp.lt.s32.totalorder %s2102_s30, %s1845_s1 }
  0x63   : > { %p1842_p11 = pnand %p1840_p10, %p1828_p4  ;;  %p1848_p2 = scmp.lt.s32.totalorder %s1846_s12, %s1839_s22 }
  0x65   : > { %p1843_p12 = pneg %p1842_p11  ;;  %p1849_p7 = por %p1848_p2, %p1847_p0 }
  0x67   : > { %p1850_p13 = pnand %p1849_p7, %p1843_p12 }
  0x69   : > { %1853 = shalt.err (!%p1850_p13)
}
  0x6a   : > { %s2284_s20 = smov 8   ;;  %s2285_s29 = smov 128  }
  0x6b   : > { %1643 = dma.hbm_to_vmem [thread:$0]  (!%p2104_p5), %s2100_s26, 256, %s2102_s30, %s2108_s13, %s2285_s29, %s2285_s29, %s2284_s20  }
  0x6c   : > { %p2286_p4 = scmp.ne.s32.totalorder %s2277_s24, 0 }
  0x6d   : > { %s413_s14 = sand.u32 (!%p2286_p4), 1, %s1892_s18   ;;  %p2287_p8 = scmp.ne.s32.totalorder (!%p2286_p4), %s2282_s28, 0 }
  0x6e   : > { %411 = sbr.rel (%p2286_p4) target bundleno = 1349 (0x545), region = 56  ;;  %s1461_s1 = sshll.u32 (!%p2286_p4), %s413_s14, 4 }
  0x6f   : > { %s414_s25 = scalar_lea.sflag (!%p2286_p4), [#allocation3], %s413_s14  ;;  %s417_s15 = scalar_lea.vmem (!%p2286_p4), [#allocation2], %s1461_s1 }
  0x73   : > { %1871 = dma.done.wait (%p2287_p8), %s414_s25, 256  }
  0x74   : > { %1873 = vsyncadd (%p2287_p8), %s414_s25, 4294967040  ;;  %p2288_p13 = scmp.eq.s32.totalorder %s1993_s23, 0 }
  0x76   : > { %1875 = dma.done.wait (%p2288_p13), [#allocation5], 832   ;;  %p2289_p9 = pmov %p2288_p13 }
  0x78   : > { %1877 = vsyncadd (%p2289_p9), [#allocation5], 4294966464  ;;  %p2290_p5 = pmov %p2289_p9 }
  0x7a   : > { %1879 = dma.done.wait (%p2290_p5), [#allocation8], 832   ;;  %p2291_p1 = pmov %p2290_p5 }
  0x7c   : > { %1881 = vsyncadd (%p2291_p1), [#allocation8], 4294966464  ;;  %p2292_p3 = pmov %p2291_p1 }
  0x7d   : > { %p2293_p6 = pmov %p2291_p1 }
  0x7e   : > { %1883 = dma.done.wait (%p2292_p3), [#allocation11], 1536  }
  0x7f   : > { %1885 = vsyncadd (%p2293_p6), [#allocation11], 4294965760  ;;  %v496_v0 = vld [vmem:[%s417_s15] sm:$0xff]  ;;  %v543_v2 = vld [vmem:[#allocation4 + $0x8] sm:$0xff]  ;;  %v1910_v5 = vmov 0.0   ;;  %vm1911_vm0 = vmmov 0   ;;  %v707_v36 = vlaneseq }
  0x80   : > { %498 = vxpose.xlu0.b32.start [1/2] (short) (narrow) %v496_v0, 16  ;;  %v542_v1 = vld [vmem:[#allocation4] sm:$0xff]  ;;  %v497_v3 = vld [vmem:[%s417_s15 + $0x8] sm:$0xff]  ;;  %1529 = vmatprep.subr.bf16.mxu1 %v1910_v5  ;;  %v547_v6 = vld [vmem:[#allocation4 + $0x10] sm:$0xff]  ;;  %vm532_vm1 = vcmask 1040384   ;;  %vm563_vm2 = vcmask 130048  }
  0x81   : > { %v544_v4 = vpack.c.bf16 %v543_v2, %v542_v1  ;;  %1523 = vmatprep.subr.bf16.mxu0 %v1910_v5  ;;  %1531 = vmatprep.mubr.msk.bf16.mxu1 %vm1911_vm0, %v1910_v5  ;;  %v548_v7 = vld [vmem:[#allocation4 + $0x18] sm:$0xff]  ;;  %v652_v20 = vld [vmem:[#allocation4 + $0x20] sm:$0xff]  ;;  %v653_v21 = vld [vmem:[#allocation4 + $0x28] sm:$0xff]  ;;  %vm550_vm3 = vsmask.f32 7424  ;;  %vm657_vm4 = vcmask 1046528  }
  0x82   : > { %1525 = vmatprep.mubr.msk.bf16.mxu0 %vm1911_vm0, %v1910_v5  ;;  %v549_v8 = vpack.c.bf16 %v548_v7, %v547_v6  ;;  %v654_v26 = vpack.c.bf16 %v653_v21, %v652_v20  ;;  %v708_v39 = vshrl.u32 %v707_v36, 7  ;;  %v710_v42 = vand.u32 127, %v707_v36  ;;  %v817_v52 = vld [vmem:[#allocation7] sm:$0xff]  ;;  %v818_v53 = vld [vmem:[#allocation7 + $0x8] sm:$0xff]  ;;  %v822_v55 = vld [vmem:[#allocation7 + $0x10] sm:$0xff]  ;;  %p483_p10 = scmp.lt.s32.totalorder %s1993_s23, 1 }
  0x83   : > { %1530 = vmatpush3.bf16.msra.mxu1 %v544_v4  ;;  %v819_v54 = vpack.c.bf16 %v818_v53, %v817_v52  ;;  %v823_v56 = vld [vmem:[#allocation7 + $0x18] sm:$0xff]  ;;  %v999_v21 = vld [vmem:[#allocation10 + $0x10] sm:$0xff]  ;;  %v1482_v53 = vld [vmem:[#allocation9 + $0x1] ss:$0 sm:$0xff]  ;;  %vm1018_vm6 = vcmask 261120  }
  0x84   : > { %499 = vxpose.xlu0.b32.end [2/2] (short) (narrow) %v497_v3, 16  ;;  %1541 = vmatprep.subr.mxu1 %v1910_v5  ;;  %v711_v43 = vmul.u32 2, %v708_v39  ;;  %v824_v57 = vpack.c.bf16 %v823_v56, %v822_v55  ;;  %v1474_v58 = vld [vmem:[#allocation6] ss:$0 sm:$0xff]  ;;  %v1476_v2 = vld [vmem:[#allocation6 + $0x1] ss:$0 sm:$0xff] }
  0x85   : > { %1524 = vmatpush3.bf16.msra.mxu0 %v549_v8  ;;  %v1477_v4 = vld [vmem:[#allocation6 + $0x2] ss:$0 sm:$0xff]  ;;  %v1483_v55 = vld [vmem:[#allocation9 + $0x2] ss:$0 sm:$0xff]  ;;  %s2299_s23 = smov (!%p483_p10, %s1993_s23), 1 }
  0x86   : > { %1535 = vmatprep.subr.bf16.mxu0 %v1910_v5  ;;  %vm712_vm5 = vcmp.eq.s32.totalorder %v710_v42, %v711_v43  ;;  %v1481_v43 = vld [vmem:[#allocation9] ss:$0 sm:$0xff]  ;;  %s1467_s1 = sshll.u32 %s2299_s23, 3 }
  0x87   : > { %v1473_v51 = vsel %vm712_vm5, 1.0, %v1910_v5  ;;  %s486_s28 = scalar_lea.vmem %s2268_s9, %s1467_s1  ;;  %s490_s23 = scalar_lea.vmem %s2269_s10, %s1467_s1 }
  0x88   : > { %s494_s22 = scalar_lea.vmem %s2270_s11, %s1467_s1 }
  0xfc   : > { %v514_v9 = vpop.trf.xlu0 }
  0xfd   : > { %v533_v10 = vrot.slane %v514_v9, 7 }
  0xff   : > { %v539_v13 = vsel %vm532_vm1, 0.0, %v533_v10 }
 0x100   : > { %v515_v11 = vpop.trf.xlu0 }
 0x101   : > { %v534_v12 = vrot.slane %v515_v11, 7 }
 0x103   : > { %v535_v14 = vsel %vm532_vm1, %v533_v10, %v534_v12  ;;  %v540_v15 = vsel %vm532_vm1, %v534_v12, 0.0 }
 0x104   : > { %v541_v16 = vpack.c.bf16 %v535_v14, %v539_v13  ;;  %v545_v17 = vpack.c.bf16 %v540_v15, %v540_v15  ;;  %v919_v14 = vld [vmem:[#allocation7 + $0x20] sm:$0xff]  ;;  %v920_v15 = vld [vmem:[#allocation7 + $0x28] sm:$0xff] }
 0x106   : > { %v559_v18 = vshll.u32 %v545_v17, 16  ;;  %1532 = vmatmul.mubr.msk.bf16.vlgmr.msra.gmra.mxu1 %vm563_vm2, %v541_v16  ;;  %v554_v19 = vshll.u32 %v541_v16, 16  ;;  %v552_v22 = vshrl.u32 %v541_v16, 16  ;;  %v659_v28 = vrot.slane %v545_v17, 1 }
 0x107   : > { %1545 = vmatprep.mubr.msk.f32.mxu1 %vm1911_vm0, %v1910_v5  ;;  %v658_v29 = vrot.slane %v541_v16, 1 }
 0x108   : > { %v556_v23 = vrot.slane %v554_v19, 1  ;;  %v561_v24 = vrot.slane %v559_v18, 1  ;;  %v921_v18 = vpack.c.bf16 %v920_v15, %v919_v14  ;;  %v1231_v15 = vld [vmem:[%s2267_s8 + $0x8] sm:$0xff] }
 0x109   : > { %v660_v30 = vsel %vm657_vm4, %v658_v29, %v659_v28  ;;  %v1008_v28 = vld [vmem:[#allocation10 + $0x38] sm:$0xff] }
 0x10a   : > { %v557_v25 = vor.u32 %v556_v23, %v552_v22  ;;  %v1000_v22 = vld [vmem:[#allocation10 + $0x18] sm:$0xff] }
 0x10b   : > { %v1002_v23 = vpack.c.bf16 %v1000_v22, %v999_v21 }
 0x10c   : > { %v562_v27 = vsel %vm550_vm3, %v557_v25, %v561_v24  ;;  %v997_v24 = vld [vmem:[#allocation10] sm:$0xff]  ;;  %v998_v25 = vld [vmem:[#allocation10 + $0x8] sm:$0xff] }
 0x10d   : > { %1526 = vmatmul.mubr.msk.bf16.vlgmr.msra.gmra.mxu0 %vm563_vm2, %v562_v27  ;;  %v1007_v27 = vld [vmem:[#allocation10 + $0x30] sm:$0xff] }
 0x10e   : > { %1536 = vmatpush3.bf16.msra.mxu0 %v654_v26  ;;  %1537 = vmatprep.mubr.msk.bf16.mxu0 %vm1911_vm0, %v1910_v5  ;;  %v1001_v26 = vpack.c.bf16 %v998_v25, %v997_v24  ;;  %v1010_v29 = vpack.c.bf16 %v1008_v28, %v1007_v27 }
 0x10f   : > { %1554 = vmatprep.subr.bf16.mxu0 %v1910_v5 }
 0x115   : > { %1538 = vmatmul.mubr.msk.bf16.vlgmr.msra.gmra.mxu0 %vm563_vm2, %v660_v30  ;;  %v1005_v30 = vld [vmem:[#allocation10 + $0x20] sm:$0xff] }
 0x116   : > { %1556 = vmatprep.mubr.msk.bf16.mxu0 %vm1911_vm0, %v1910_v5  ;;  %1555 = vmatpush3.bf16.msra.mxu0 %v819_v54 }
 0x117   : > { %1566 = vmatprep.subr.bf16.mxu0 %v1910_v5 }
 0x1c6   : > { %v644_v31 = vpop.f32.mrf.mxu1 }
 0x1c8   : > { %v1533_v32 = vpop.f32.mrf.mxu1 }
 0x1ca   : > { %v647_v33 = vpop.f32.mrf.mxu1 }
 0x1cc   : > { %v1534_v34 = vpop.f32.mrf.mxu1 }
 0x1cd   : > { %v601_v35 = vpop.f32.mrf.mxu0 }
 0x1ce   : > { %v645_v47 = vadd.f32 %v644_v31, %v601_v35  ;;  %v1006_v31 = vld [vmem:[#allocation10 + $0x28] sm:$0xff] }
 0x1cf   : > { %v1527_v37 = vpop.f32.mrf.mxu0  ;;  %v1009_v32 = vpack.c.bf16 %v1006_v31, %v1005_v30 }
 0x1d1   : > { %v604_v38 = vpop.f32.mrf.mxu0 }
 0x1d2   : > { %v648_v45 = vadd.f32 %v647_v33, %v604_v38 }
 0x1d3   : > { %v1528_v40 = vpop.f32.mrf.mxu0 }
 0x1d5   : > { %v698_v41 = vpop.f32.mrf.mxu0 }
 0x1d6   : > { %v705_v50 = vadd.f32 %v698_v41, %v645_v47 }
 0x1d7   : > { %v1539_v44 = vpop.f32.mrf.mxu0 }
 0x1d9   : > { %v701_v46 = vpop.f32.mrf.mxu0 }
 0x1da   : > { %v706_v48 = vadd.f32 %v701_v46, %v648_v45 }
 0x1db   : > { %v1540_v49 = vpop.f32.mrf.mxu0 }
 0x1dc   : > { %1542 = vmatpush3.msra.mxu1 %v706_v48 }
 0x1dd   : > { %1543 = vmatprep.subr.mxu1 %v1910_v5 }
 0x1de   : > { %1544 = vmatpush3.msra.mxu1 %v705_v50 }
 0x1df   : > { %1546 = vmatmul.mubr.msk.f32.vlgmr.msra.gmra.mxu1 %vm563_vm2, %v1473_v51  ;;  %1548 = vmatprep.subr.bf16.mxu1 %v1910_v5 }
 0x1e0   : > { %1550 = vmatprep.mubr.msk.bf16.mxu1 %vm1911_vm0, %v1910_v5  ;;  %1549 = vmatpush3.bf16.msra.mxu1 %v824_v57 }
 0x1e1   : > { %1560 = vmatprep.subr.bf16.mxu1 %v1910_v5 }
 0x29f   : > { %v789_v59 = vpop.f32.mrf.mxu1 }
 0x2a0   : > { %v790_v60 = vadd.f32 %v1474_v58, %v789_v59 }
 0x2a1   : > { %v1547_v61 = vpop.f32.mrf.mxu1 }
 0x2a2   : > { %v793_v62 = vadd.f32 3.0, %v790_v60 }
 0x2a4   : > { %v794_v63 = vmax.f32 %v793_v62, 0.0 }
 0x2a6   : > { %v795_v0 = vmin.f32 %v794_v63, 6.0 }
 0x2a8   : > { %v796_v1 = vmul.f32 %v795_v0, %v790_v60  ;;  %v1108_v0 = vld [vmem:[#allocation10 + $0x50] sm:$0xff] }
 0x2aa   : > { %v798_v3 = vmul.f32 0.16666667, %v796_v1  ;;  %v1109_v1 = vld [vmem:[#allocation10 + $0x58] sm:$0xff] }
 0x2ac   : > { %v804_v6 = vmul.f32 %v1476_v2, %v798_v3 }
 0x2ae   : > { %v810_v7 = vadd.f32 %v1477_v4, %v804_v6  ;;  %v1111_v4 = vpack.c.bf16 %v1109_v1, %v1108_v0 }
 0x2b0   : > { %v812_v8 = vrot.slane %v810_v7, 7  ;;  %v1106_v7 = vld [vmem:[#allocation10 + $0x40] sm:$0xff] }
 0x2b2   : > { %v814_v9 = vsel %vm532_vm1, 0.0, %v812_v8  ;;  %v815_v10 = vsel %vm532_vm1, %v812_v8, 0.0  ;;  %v1107_v8 = vld [vmem:[#allocation10 + $0x48] sm:$0xff] }
 0x2b3   : > { %v816_v11 = vpack.c.bf16 %v814_v9, %v814_v9  ;;  %v820_v12 = vpack.c.bf16 %v815_v10, %v814_v9  ;;  %v1110_v9 = vpack.c.bf16 %v1107_v8, %v1106_v7 }
 0x2b5   : > { %1557 = vmatmul.mubr.msk.bf16.vlgmr.msra.gmra.mxu0 %vm563_vm2, %v816_v11  ;;  %v828_v13 = vshll.u32 %v820_v12, 16  ;;  %v826_v16 = vshrl.u32 %v820_v12, 16  ;;  %v923_v20 = vrot.slane %v820_v12, 1  ;;  %v1182_v11 = vld [vmem:[%s2266_s7] sm:$0xff]  ;;  %v1183_v12 = vld [vmem:[%s2266_s7 + $0x8] sm:$0xff] }
 0x2b6   : > { %1570 = vmatprep.mubr.msk.bf16.mxu0 %vm1911_vm0, %v1910_v5  ;;  %1567 = vmatpush3.bf16.msra.mxu0 %v1010_v29  ;;  %v1185_v14 = vpack.c.bf16 %v1183_v12, %v1182_v11 }
 0x2b7   : > { %v830_v17 = vrot.slane %v828_v13, 1  ;;  %1568 = vmatprep.subr.bf16.mxu0 %v1910_v5  ;;  %v1230_v13 = vld [vmem:[%s2267_s8] sm:$0xff] }
 0x2b9   : > { %v831_v19 = vor.u32 %v830_v17, %v826_v16  ;;  %v1232_v16 = vpack.c.bf16 %v1231_v15, %v1230_v13 }
 0x2ba   : > { %1569 = vmatpush3.bf16.msra.mxu0 %v1009_v32 }
 0x2bb   : > { %1551 = vmatmul.mubr.msk.bf16.vlgmr.msra.gmra.mxu1 %vm563_vm2, %v831_v19  ;;  %1582 = vmatprep.subr.bf16.mxu0 %v1910_v5 }
 0x2bc   : > { %1561 = vmatpush3.bf16.msra.mxu1 %v921_v18  ;;  %1562 = vmatprep.mubr.msk.bf16.mxu1 %vm1911_vm0, %v1910_v5 }
 0x2bd   : > { %1574 = vmatprep.subr.bf16.mxu1 %v1910_v5 }
 0x2c3   : > { %1563 = vmatmul.mubr.msk.bf16.vlgmr.msra.gmra.mxu1 %vm563_vm2, %v923_v20 }
 0x2c4   : > { %1578 = vmatprep.mubr.msk.bf16.mxu1 %vm1911_vm0, %v1910_v5  ;;  %1575 = vmatpush3.bf16.msra.mxu1 %v1002_v23 }
 0x2c5   : > { %1576 = vmatprep.subr.bf16.mxu1 %v1910_v5 }
 0x2c8   : > { %1577 = vmatpush3.bf16.msra.mxu1 %v1001_v26  ;;  %v1487_v26 = vld [vmem:[%s2265_s6] ss:$0 sm:$0xff] }
 0x2c9   : > { %1590 = vmatprep.subr.bf16.mxu1 %v1910_v5 }
 0x375   : > { %v912_v33 = vpop.f32.mrf.mxu0 }
 0x377   : > { %v1558_v34 = vpop.f32.mrf.mxu0 }
 0x379   : > { %v915_v35 = vpop.f32.mrf.mxu0 }
 0x37b   : > { %v869_v36 = vpop.f32.mrf.mxu1  ;;  %v1559_v37 = vpop.f32.mrf.mxu0 }
 0x37c   : > { %v913_v41 = vadd.f32 %v912_v33, %v869_v36  ;;  %v1488_v36 = vld [vmem:[%s2265_s6 + $0x1] ss:$0 sm:$0xff] }
 0x37d   : > { %v1552_v38 = vpop.f32.mrf.mxu1 }
 0x37e   : > { %v1489_v38 = vld [vmem:[%s2265_s6 + $0x2] ss:$0 sm:$0xff] }
 0x37f   : > { %v872_v39 = vpop.f32.mrf.mxu1 }
 0x381   : > { %v1553_v40 = vpop.f32.mrf.mxu1 }
 0x383   : > { %v961_v42 = vpop.f32.mrf.mxu1 }
 0x384   : > { %v967_v44 = vadd.f32 %v961_v42, %v913_v41 }
 0x385   : > { %v1564_v45 = vpop.f32.mrf.mxu1 }
 0x386   : > { %v973_v46 = vadd.f32 %v1481_v43, %v967_v44 }
 0x387   : > { %v964_v47 = vpop.f32.mrf.mxu1 }
 0x388   : > { %v974_v48 = vadd.f32 3.0, %v973_v46 }
 0x389   : > { %v1565_v49 = vpop.f32.mrf.mxu1 }
 0x38a   : > { %v975_v50 = vmax.f32 %v974_v48, 0.0 }
 0x38c   : > { %v976_v51 = vmin.f32 %v975_v50, 6.0 }
 0x38e   : > { %v977_v52 = vmul.f32 %v976_v51, %v973_v46 }
 0x390   : > { %v978_v54 = vmul.f32 0.16666667, %v977_v52 }
 0x392   : > { %v984_v56 = vmul.f32 %v1482_v53, %v978_v54 }
 0x394   : > { %v990_v57 = vadd.f32 %v1483_v55, %v984_v56 }
 0x396   : > { %v992_v58 = vrot.slane %v990_v57, 7 }
 0x398   : > { %v994_v59 = vsel %vm532_vm1, 0.0, %v992_v58  ;;  %v995_v60 = vsel %vm532_vm1, %v992_v58, 0.0 }
 0x399   : > { %v1003_v61 = vpack.c.bf16 %v995_v60, %v994_v59  ;;  %v996_v62 = vpack.c.bf16 %v994_v59, %v994_v59 }
 0x39b   : > { %1579 = vmatmul.mubr.msk.bf16.vlgmr.msra.gmra.mxu1 %vm1018_vm6, %v996_v62  ;;  %v1014_v63 = vshll.u32 %v1003_v61, 16  ;;  %v1012_v2 = vshrl.u32 %v1003_v61, 16  ;;  %v1113_v10 = vrot.slane %v1003_v61, 1 }
 0x39c   : > { %1592 = vmatprep.mubr.msk.bf16.mxu1 %vm1911_vm0, %v1910_v5  ;;  %1591 = vmatpush3.bf16.msra.mxu1 %v1185_v14 }
 0x39d   : > { %v1016_v3 = vrot.slane %v1014_v63, 1 }
 0x39f   : > { %v1017_v6 = vor.u32 %v1016_v3, %v1012_v2 }
 0x3a1   : > { %1571 = vmatmul.mubr.msk.bf16.vlgmr.msra.gmra.mxu0 %vm1018_vm6, %v1017_v6 }
 0x3a2   : > { %1583 = vmatpush3.bf16.msra.mxu0 %v1111_v4  ;;  %1586 = vmatprep.mubr.msk.bf16.mxu0 %vm1911_vm0, %v1910_v5 }
 0x3a3   : > { %1584 = vmatprep.subr.bf16.mxu0 %v1910_v5 }
 0x3a6   : > { %1585 = vmatpush3.bf16.msra.mxu0 %v1110_v9 }
 0x3a7   : > { %1596 = vmatprep.subr.bf16.mxu0 %v1910_v5 }
 0x3a9   : > { %1587 = vmatmul.mubr.msk.bf16.vlgmr.msra.gmra.mxu0 %vm1018_vm6, %v1113_v10 }
 0x3aa   : > { %1598 = vmatprep.mubr.msk.bf16.mxu0 %vm1911_vm0, %v1910_v5  ;;  %1597 = vmatpush3.bf16.msra.mxu0 %v1232_v16 }
 0x45b   : > { %v1099_v5 = vpop.f32.mrf.mxu1 }
 0x45d   : > { %v1580_v17 = vpop.f32.mrf.mxu1 }
 0x45f   : > { %v1102_v18 = vpop.f32.mrf.mxu1 }
 0x461   : > { %v1056_v19 = vpop.f32.mrf.mxu0  ;;  %v1581_v20 = vpop.f32.mrf.mxu1 }
 0x462   : > { %v1100_v24 = vadd.f32 %v1099_v5, %v1056_v19 }
 0x463   : > { %v1572_v21 = vpop.f32.mrf.mxu0 }
 0x465   : > { %v1059_v22 = vpop.f32.mrf.mxu0 }
 0x467   : > { %v1573_v23 = vpop.f32.mrf.mxu0 }
 0x469   : > { %v1151_v25 = vpop.f32.mrf.mxu0 }
 0x46a   : > { %v1157_v27 = vadd.f32 %v1151_v25, %v1100_v24 }
 0x46b   : > { %v1588_v28 = vpop.f32.mrf.mxu0 }
 0x46c   : > { %v1163_v29 = vadd.f32 %v1487_v26, %v1157_v27 }
 0x46d   : > { %v1154_v30 = vpop.f32.mrf.mxu0 }
 0x46e   : > { %v1164_v31 = vadd.f32 3.0, %v1163_v29 }
 0x46f   : > { %v1589_v32 = vpop.f32.mrf.mxu0 }
 0x470   : > { %v1165_v33 = vmax.f32 %v1164_v31, 0.0 }
 0x472   : > { %v1166_v34 = vmin.f32 %v1165_v33, 6.0 }
 0x474   : > { %v1167_v35 = vmul.f32 %v1166_v34, %v1163_v29 }
 0x476   : > { %v1168_v37 = vmul.f32 0.16666667, %v1167_v35 }
 0x478   : > { %v1174_v39 = vmul.f32 %v1488_v36, %v1168_v37 }
 0x47a   : > { %v1180_v40 = vadd.f32 %v1489_v38, %v1174_v39 }
 0x47c   : > { %v1184_v41 = vpack.c.bf16 %v1180_v40, %v1180_v40  ;;  %1181 = vst.msk [vmem:[%s486_s28] sm:$0xff] %vm563_vm2, %v1180_v40 }
 0x47e   : > { %1593 = vmatmul.mubr.msk.bf16.vlgmr.msra.gmra.mxu1 %vm563_vm2, %v1184_v41  ;;  %1599 = vmatmul.mubr.msk.bf16.vlgmr.msra.gmra.mxu0 %vm563_vm2, %v1184_v41 }
 0x53e   : > { %v1223_v42 = vpop.f32.mrf.mxu1  ;;  %v1267_v43 = vpop.f32.mrf.mxu0 }
 0x53f   : > { %1229 = vst.msk [vmem:[%s490_s23] sm:$0xff] %vm563_vm2, %v1223_v42  ;;  %1273 = vst.msk [vmem:[%s494_s22] sm:$0xff] %vm563_vm2, %v1267_v43 }
 0x540   : > { %v1594_v44 = vpop.f32.mrf.mxu1  ;;  %v1600_v45 = vpop.f32.mrf.mxu0 }
 0x542   : > { %v1226_v46 = vpop.f32.mrf.mxu1  ;;  %v1270_v47 = vpop.f32.mrf.mxu0 }
 0x544   : > { %v1595_v48 = vpop.f32.mrf.mxu1  ;;  %v1601_v49 = vpop.f32.mrf.mxu0 }
 0x545 PF: > { %p25_p11 = scmp.ge.s32.totalorder %s2075_s27, 4   ;;  %s2294_s17 = smov %s1892_s18 }
 0x546   : > { %s2295_s18 = smov %s1896_s19  ;;  %s2296_s19 = smov %s2086_s21 }
 0x547   : > { %s2297_s20 = smov %s2075_s27  ;;  %27 = sbr.rel (!%p25_p11) target bundleno = 8 (0x8), region = 146 }
 0x54c   :  { %1321 = vsyncpa [#allocation3], 1 }
 0x54d   :  { %1323 = vsyncpa [#allocation3 + $0x1], 1 }
 0x54e   :  { %1324 = vsyncpa [#allocation5], 1 }
 0x54f   :  { %1325 = vsyncpa [#allocation8], 1 }
 0x550   :  { %1326 = vsyncpa [#allocation11], 1 }

// kernel: convformer_forward_pallas.5
= control target key start
LH: loop header
LB: loop body
LE: loop exit
PB: predicated region body
PF: predicated region fallthrough
CT: control target
= control target key end

     0   :  { %s1858_s17 = smov 0   ;;  %s2086_s0 = inlined_call_operand.vmem [shape: f32[2,8,16], index: 0, kind: input, shape index: {}]   ;;  %s2087_s1 = inlined_call_operand.vmem [shape: f32[2,8,16], index: 1, kind: input, shape index: {}]   ;;  %s2088_s2 = inlined_call_operand.vmem [shape: f32[2,8,16], index: 2, kind: input, shape index: {}]   ;;  %s2089_s3 = inlined_call_operand.vmem [shape: f32[16,16], index: 3, kind: input, shape index: {}]   ;;  %s2090_s4 = inlined_call_operand.vmem [shape: f32[3,16,16], index: 4, kind: input, shape index: {}]   ;;  %s2091_s5 = inlined_call_operand.vmem [shape: f32[1,16], index: 5, kind: input, shape index: {}]   ;;  %s2092_s6 = inlined_call_operand.vmem [shape: f32[3,16,16], index: 6, kind: input, shape index: {}]   ;;  %s2093_s7 = inlined_call_operand.vmem [shape: f32[1,16], index: 7, kind: input, shape index: {}]   ;;  %s2094_s8 = inlined_call_operand.vmem [shape: f32[16,16], index: 8, kind: input, shape index: {}]   ;;  %s2095_s9 = inlined_call_operand.vmem [shape: f32[1,16], index: 9, kind: input, shape index: {}]   ;;  %s2096_s10 = inlined_call_operand.vmem [shape: f32[2,16], index: 10, kind: input, shape index: {}]   ;;  %s2097_s11 = inlined_call_operand.vmem [shape: f32[2,8,16], index: 11, kind: output, shape index: {}]  }
   0x1 LB: > { %s1571_s18 = sadd.s32 4294967295, %s1794_s17   ;;  %p1575_p0 = scmp.ge.s32.totalorder %s1794_s17, 1  ;;  %s1794_s17 = sphi %s1858_s17, %s21_s17  }
   0x2   : > { %p354_p1 = scmp.lt.s32.totalorder %s1794_s17, 3 }
   0x4   : > { %p355_p2 = pnand %p1575_p0, %p354_p1 }
   0x5   : > { %p400_p3 = scmp.lt.s32.totalorder (!%p355_p2), %s1571_s18, 1 }
   0x6   : > { %358 = sbr.rel (%p355_p2) target bundleno = 2185 (0x889), region = 64 }
   0xb   : > { %v418_v0 = vld [vmem:[%s2089_s3] sm:$0xff]  ;;  %v419_v1 = vld [vmem:[%s2089_s3 + $0x8] sm:$0xff]  ;;  %v1796_v2 = vmov 0.0   ;;  %vm1797_vm0 = vmmov 0   ;;  %v1581_v4 = vld [vmem:[%s2090_s4 + $0x10] sm:$0xff]  ;;  %s2099_s18 = smov (!%p400_p3, %s1571_s18), 1  ;;  %v625_v44 = vlaneseq }
   0xc   : > { %1654 = vmatprep.subr.bf16.mxu0 %v1796_v2  ;;  %v421_v3 = vpack.c.bf16 %v419_v1, %v418_v0  ;;  %1656 = vmatprep.mubr.msk.bf16.mxu0 %vm1797_vm0, %v1796_v2  ;;  %v1582_v5 = vld [vmem:[%s2090_s4 + $0x18] sm:$0xff]  ;;  %v474_v7 = vld [vmem:[%s2090_s4] sm:$0xff]  ;;  %v475_v8 = vld [vmem:[%s2090_s4 + $0x8] sm:$0xff]  ;;  %s1890_s12 = sshll.u32 %s2099_s18, 3  ;;  %vm422_vm1 = vcmask 130048   ;;  %vm470_vm2 = vcmask 1040384  }
   0xd   : > { %1660 = vmatprep.subr.bf16.mxu1 %v1796_v2  ;;  %v481_v6 = vpack.c.bf16 %v1582_v5, %v1581_v4  ;;  %1662 = vmatprep.mubr.msk.bf16.mxu1 %vm1797_vm0, %v1796_v2  ;;  %s403_s15 = scalar_lea.vmem %s2086_s0, %s1890_s12  ;;  %s407_s20 = scalar_lea.vmem %s2087_s1, %s1890_s12  ;;  %v476_v11 = vpack.c.bf16 %v475_v8, %v474_v7  ;;  %v1585_v19 = vld [vmem:[%s2090_s4 + $0x20] sm:$0xff]  ;;  %v1586_v20 = vld [vmem:[%s2090_s4 + $0x28] sm:$0xff]  ;;  %v1591_v31 = vld [vmem:[%s2092_s6 + $0x10] sm:$0xff]  ;;  %v626_v47 = vshrl.u32 %v625_v44, 7  ;;  %v1956_v52 = vand.u32 127, %v625_v44 }
   0xe   : > { %1655 = vmatpush3.bf16.msra.mxu0 %v421_v3  ;;  %v1902_v9 = vld [vmem:[%s403_s15] sm:$0xff]  ;;  %v578_v23 = vpack.c.bf16 %v1586_v20, %v1585_v19  ;;  %s411_s26 = scalar_lea.vmem %s2088_s2, %s1890_s12  ;;  %v1592_v32 = vld [vmem:[%s2092_s6 + $0x18] sm:$0xff]  ;;  %v1596_v39 = vld [vmem:[%s2092_s6 + $0x28] sm:$0xff]  ;;  %vm640_vm4 = vcmask 64512   ;;  %vm1015_vm15 = vcmask 31744   ;;  %s415_s21 = scalar_lea.vmem %s2097_s11, %s1890_s12 }
   0xf   : > { %1666 = vmatprep.subr.bf16.mxu0 %v1796_v2  ;;  %1661 = vmatpush3.bf16.msra.mxu1 %v481_v6  ;;  %v466_v10 = vld [vmem:[%s407_s20] sm:$0xff]  ;;  %v420_v12 = vpack.c.bf16 %v1902_v9, %v1902_v9  ;;  %v734_v34 = vpack.c.bf16 %v1592_v32, %v1591_v31  ;;  %v629_v53 = vmul.u32 2, %v626_v47  ;;  %v728_v59 = vld [vmem:[%s2092_s6 + $0x8] sm:$0xff]  ;;  %vm1030_vm5 = vcmp.ge.s32.totalorder %v1956_v52, 4 }
  0x10   : > { %1672 = vmatprep.subr.bf16.mxu1 %v1796_v2  ;;  %v468_v13 = vrot.slane %v466_v10, 7  ;;  %v720_v26 = vld [vmem:[%s411_s26] sm:$0xff]  ;;  %vm1031_vm6 = vcmp.lt.s32.totalorder %v1956_v52, 8  ;;  %vm961_vm7 = vcmp.lt.s32.totalorder %v1956_v52, 4  ;;  %vm1188_vm9 = vcmp.ge.s32.totalorder %v1956_v52, 8 }
  0x11   : > { %1657 = vmatmul.mubr.msk.bf16.vlgmr.msra.gmra.mxu0 %vm422_vm1, %v420_v12  ;;  %v722_v27 = vrot.slane %v720_v26, 7  ;;  %v1595_v38 = vld [vmem:[%s2092_s6 + $0x20] sm:$0xff]  ;;  %vm630_vm3 = vcmp.eq.s32.totalorder %v1956_v52, %v629_v53  ;;  %vm1032_vm8 = vmand %vm1030_vm5, %vm1031_vm6  ;;  %vm1189_vm10 = vcmp.lt.s32.totalorder %v1956_v52, 12  ;;  %vm1300_vm11 = vcmp.ge.s32.totalorder %v1956_v52, 12 }
  0x12   : > { %v471_v14 = vsel %vm470_vm2, 0.0, %v468_v13  ;;  %v472_v15 = vsel %vm470_vm2, %v468_v13, 0.0  ;;  %1667 = vmatpush3.bf16.msra.mxu0 %v476_v11  ;;  %1668 = vmatprep.mubr.msk.bf16.mxu0 %vm1797_vm0, %v1796_v2  ;;  %v831_v40 = vpack.c.bf16 %v1596_v39, %v1595_v38  ;;  %v727_v58 = vld [vmem:[%s2092_s6] sm:$0xff]  ;;  %v1588_v63 = vsel %vm630_vm3, 1.0, %v1796_v2  ;;  %vm1190_vm13 = vmand %vm1188_vm9, %vm1189_vm10 }
  0x13   : > { %v477_v16 = vpack.c.bf16 %v472_v15, %v471_v14  ;;  %1678 = vmatprep.subr.mxu0 %v1796_v2  ;;  %v473_v21 = vpack.c.bf16 %v471_v14, %v471_v14  ;;  %v724_v28 = vsel %vm470_vm2, 0.0, %v722_v27  ;;  %v725_v29 = vsel %vm470_vm2, %v722_v27, 0.0  ;;  %v1589_v15 = vld [vmem:[%s2091_s5] ss:$0 sm:$0xff] }
  0x14   : > { %v730_v30 = vpack.c.bf16 %v725_v29, %v724_v28  ;;  %v729_v0 = vpack.c.bf16 %v728_v59, %v727_v58  ;;  %v726_v4 = vpack.c.bf16 %v724_v28, %v724_v28  ;;  %v1600_v29 = vsel %vm961_vm7, 1.0, %v1796_v2  ;;  %v1598_v39 = vld [vmem:[%s2093_s7] ss:$0 sm:$0xff] }
  0x15   : > { %v483_v17 = vshrl.u32 %v477_v16, 16  ;;  %v485_v18 = vshll.u32 %v477_v16, 16  ;;  %v580_v25 = vrot.slane %v477_v16, 1  ;;  %vm1301_vm12 = vcmp.lt.s32.totalorder %v1956_v52, 16 }
  0x16   : > { %v738_v33 = vshll.u32 %v730_v30, 16  ;;  %v736_v35 = vshrl.u32 %v730_v30, 16  ;;  %v833_v41 = vrot.slane %v730_v30, 1  ;;  %v1602_v30 = vsel %vm1032_vm8, 1.0, %v1796_v2  ;;  %vm1302_vm14 = vmand %vm1300_vm11, %vm1301_vm12 }
  0x17   : > { %v487_v22 = vrot.slane %v485_v18, 1  ;;  %vm1098_vm2 = vcmask 1041408  }
  0x18   : > { %v740_v36 = vrot.slane %v738_v33, 1 }
  0x19   : > { %v488_v24 = vor.u32 %v487_v22, %v483_v17  ;;  %1669 = vmatmul.mubr.msk.bf16.vlgmr.msra.gmra.mxu0 %vm422_vm1, %v473_v21 }
  0x1a   : > { %1680 = vmatprep.mubr.msk.f32.mxu0 %vm1797_vm0, %v1796_v2  ;;  %v741_v37 = vor.u32 %v740_v36, %v736_v35 }
  0x1b   : > { %1663 = vmatmul.mubr.msk.bf16.vlgmr.msra.gmra.mxu1 %vm422_vm1, %v488_v24 }
  0x1c   : > { %1673 = vmatpush3.bf16.msra.mxu1 %v578_v23  ;;  %1674 = vmatprep.mubr.msk.bf16.mxu1 %vm1797_vm0, %v1796_v2 }
  0x1d   : > { %1683 = vmatprep.subr.bf16.mxu1 %v1796_v2 }
  0x23   : > { %1675 = vmatmul.mubr.msk.bf16.vlgmr.msra.gmra.mxu1 %vm422_vm1, %v580_v25 }
  0x24   : > { %1685 = vmatprep.mubr.msk.bf16.mxu1 %vm1797_vm0, %v1796_v2  ;;  %1684 = vmatpush3.bf16.msra.mxu1 %v734_v34 }
  0x25   : > { %1695 = vmatprep.subr.bf16.mxu1 %v1796_v2 }
  0x2b   : > { %1686 = vmatmul.mubr.msk.bf16.vlgmr.msra.gmra.mxu1 %vm422_vm1, %v741_v37 }
  0x2c   : > { %1697 = vmatprep.mubr.msk.bf16.mxu1 %vm1797_vm0, %v1796_v2  ;;  %1696 = vmatpush3.bf16.msra.mxu1 %v831_v40 }
  0x2d   : > { %1706 = vmatprep.subr.bf16.mxu1 %v1796_v2 }
  0x33   : > { %1698 = vmatmul.mubr.msk.bf16.vlgmr.msra.gmra.mxu1 %vm422_vm1, %v833_v41 }
  0x34   : > { %1708 = vmatprep.mubr.msk.bf16.mxu1 %vm1797_vm0, %v1796_v2 }
  0xd1   : > { %v1954_v42 = vpop.f32.mrf.mxu0 }
  0xd2   : > { %v1996_v38 = vpack.c.bf16 %v1954_v42, %v1954_v42 }
  0xd3   : > { %v1658_v43 = vpop.f32.mrf.mxu0 }
  0xd5   : > { %v463_v45 = vpop.f32.mrf.mxu0 }
  0xd7   : > { %v1659_v46 = vpop.f32.mrf.mxu0 }
  0xd9   : > { %v569_v48 = vpop.f32.mrf.mxu0 }
  0xdb   : > { %v526_v49 = vpop.f32.mrf.mxu1  ;;  %v1670_v50 = vpop.f32.mrf.mxu0 }
  0xdc   : > { %v570_v60 = vadd.f32 %v569_v48, %v526_v49  ;;  %v1606_v48 = vsel %vm1190_vm13, 1.0, %v1796_v2  ;;  %v1609_v49 = vsel %vm1302_vm14, 1.0, %v1796_v2 }
  0xdd   : > { %v1664_v51 = vpop.f32.mrf.mxu1  ;;  %v572_v54 = vpop.f32.mrf.mxu0 }
  0xdf   : > { %v529_v55 = vpop.f32.mrf.mxu1  ;;  %v1671_v56 = vpop.f32.mrf.mxu0 }
  0xe1   : > { %v1665_v57 = vpop.f32.mrf.mxu1 }
  0xe3   : > { %v618_v61 = vpop.f32.mrf.mxu1 }
  0xe4   : > { %v624_v62 = vadd.f32 %v618_v61, %v570_v60 }
  0xe5   : > { %v1676_v1 = vpop.f32.mrf.mxu1 }
  0xe6   : > { %1679 = vmatpush3.msra.mxu0 %v624_v62 }
  0xe7   : > { %v621_v3 = vpop.f32.mrf.mxu1  ;;  %1681 = vmatmul.mubr.msk.f32.vlgmr.msra.gmra.mxu0 %vm640_vm4, %v1588_v63  ;;  %1689 = vmatprep.subr.bf16.mxu0 %v1796_v2 }
  0xe8   : > { %1690 = vmatpush3.bf16.msra.mxu0 %v729_v0  ;;  %1691 = vmatprep.mubr.msk.bf16.mxu0 %vm1797_vm0, %v1796_v2 }
  0xe9   : > { %v1677_v5 = vpop.f32.mrf.mxu1  ;;  %1701 = vmatprep.subr.mxu0 %v1796_v2 }
  0xeb   : > { %1692 = vmatmul.mubr.msk.bf16.vlgmr.msra.gmra.mxu0 %vm422_vm1, %v726_v4  ;;  %v779_v6 = vpop.f32.mrf.mxu1 }
  0xec   : > { %1703 = vmatprep.mubr.msk.f32.mxu0 %vm1797_vm0, %v1796_v2 }
  0xed   : > { %v1687_v7 = vpop.f32.mrf.mxu1 }
  0xef   : > { %v782_v8 = vpop.f32.mrf.mxu1 }
  0xf1   : > { %v1688_v10 = vpop.f32.mrf.mxu1 }
  0xf3   : > { %v871_v11 = vpop.f32.mrf.mxu1 }
  0xf5   : > { %v1699_v12 = vpop.f32.mrf.mxu1 }
  0xf7   : > { %v874_v13 = vpop.f32.mrf.mxu1 }
  0xf9   : > { %v1700_v14 = vpop.f32.mrf.mxu1 }
 0x1a7   : > { %v710_v16 = vpop.f32.mrf.mxu0 }
 0x1a8   : > { %v711_v17 = vadd.f32 %v1589_v15, %v710_v16 }
 0x1a9   : > { %v1682_v18 = vpop.f32.mrf.mxu0 }
 0x1aa   : > { %v714_v19 = vadd.f32 3.0, %v711_v17 }
 0x1ab   : > { %v822_v20 = vpop.f32.mrf.mxu0 }
 0x1ac   : > { %v715_v21 = vmax.f32 %v714_v19, 0.0  ;;  %v823_v22 = vadd.f32 %v822_v20, %v779_v6 }
 0x1ad   : > { %v1693_v23 = vpop.f32.mrf.mxu0 }
 0x1ae   : > { %v716_v24 = vmin.f32 %v715_v21, 6.0  ;;  %v877_v25 = vadd.f32 %v871_v11, %v823_v22 }
 0x1af   : > { %v825_v26 = vpop.f32.mrf.mxu0 }
 0x1b0   : > { %v717_v27 = vmul.f32 %v716_v24, %v711_v17  ;;  %1702 = vmatpush3.msra.mxu0 %v877_v25 }
 0x1b1   : > { %v1694_v28 = vpop.f32.mrf.mxu0  ;;  %1712 = vmatprep.subr.bf16.mxu0 %v1796_v2  ;;  %1704 = vmatmul.mubr.msk.f32.vlgmr.msra.gmra.mxu0 %vm640_vm4, %v1588_v63 }
 0x1b2   : > { %v1984_v31 = vmul.f32 0.16666667, %v717_v27  ;;  %1714 = vmatprep.mubr.msk.bf16.mxu0 %vm1797_vm0, %v1796_v2 }
 0x1b4   : > { %v966_v32 = vmul.f32 %v1600_v29, %v1984_v31  ;;  %v1035_v33 = vmul.f32 %v1602_v30, %v1984_v31  ;;  %v1193_v18 = vmul.f32 %v1606_v48, %v1984_v31  ;;  %v1305_v24 = vmul.f32 %v1609_v49, %v1984_v31 }
 0x1b6   : > { %v967_v34 = vpack.c.bf16 %v966_v32, %v966_v32  ;;  %v1036_v35 = vpack.c.bf16 %v1035_v33, %v1035_v33  ;;  %v1194_v21 = vpack.c.bf16 %v1193_v18, %v1193_v18  ;;  %v1306_v25 = vpack.c.bf16 %v1305_v24, %v1305_v24 }
 0x1b8   : > { %v972_v36 = vsel %vm422_vm1, %v967_v34, 0  ;;  %v1038_v37 = vsel %vm422_vm1, %v1036_v35, 0  ;;  %v1196_v23 = vsel %vm422_vm1, %v1194_v21, 0  ;;  %v1308_v26 = vsel %vm422_vm1, %v1306_v25, 0 }
 0x1b9   : > { %1707 = vmatpush3.bf16.xpose.msra.mxu1 %v972_v36  ;;  %1713 = vmatpush3.bf16.xpose.msra.mxu0 %v1038_v37 }
 0x1ba   : > { %1718 = vmatprep.subr.bf16.mxu1 %v1796_v2  ;;  %1724 = vmatprep.subr.bf16.mxu0 %v1796_v2 }
 0x1c0   : > { %1709 = vmatmul.mubr.msk.bf16.vlgmr.msra.gmra.mxu1 %vm422_vm1, %v1996_v38  ;;  %1715 = vmatmul.mubr.msk.bf16.vlgmr.msra.gmra.mxu0 %vm422_vm1, %v1996_v38 }
 0x1c1   : > { %1720 = vmatprep.mubr.msk.bf16.mxu1 %vm1797_vm0, %v1796_v2  ;;  %1726 = vmatprep.mubr.msk.bf16.mxu0 %vm1797_vm0, %v1796_v2 }
 0x271   : > { %v951_v40 = vpop.f32.mrf.mxu0 }
 0x272   : > { %v952_v41 = vadd.f32 %v1598_v39, %v951_v40 }
 0x273   : > { %v1705_v42 = vpop.f32.mrf.mxu0 }
 0x274   : > { %v955_v43 = vadd.f32 3.0, %v952_v41 }
 0x276   : > { %v956_v44 = vmax.f32 %v955_v43, 0.0 }
 0x278   : > { %v957_v45 = vmin.f32 %v956_v44, 6.0 }
 0x27a   : > { %v958_v46 = vmul.f32 %v957_v45, %v952_v41 }
 0x27c   : > { %v959_v47 = vmul.f32 0.16666667, %v958_v46 }
 0x27e   : > { %v1093_v50 = vmul.f32 %v1602_v30, %v959_v47  ;;  %v1028_v51 = vmul.f32 %v1600_v29, %v959_v47  ;;  %v1251_v53 = vmul.f32 %v1606_v48, %v959_v47  ;;  %v1363_v54 = vmul.f32 %v1609_v49, %v959_v47 }
 0x280   : > { %v1008_v55 = vpop.f32.mrf.mxu1  ;;  %v1074_v56 = vpop.f32.mrf.mxu0  ;;  %v1094_v57 = vpack.c.bf16 %v1093_v50, %v1093_v50  ;;  %v1029_v58 = vpack.c.bf16 %v1028_v51, %v1028_v51  ;;  %v1252_v52 = vpack.c.bf16 %v1251_v53, %v1251_v53  ;;  %v1364_v59 = vpack.c.bf16 %v1363_v54, %v1363_v54 }
 0x281   : > { %v1014_v60 = vmul.f32 0.5, %v1008_v55  ;;  %v1080_v61 = vmul.f32 0.5, %v1074_v56 }
 0x282   : > { %v1710_v62 = vpop.f32.mrf.mxu1  ;;  %v1716_v63 = vpop.f32.mrf.mxu0  ;;  %v1100_v0 = vsel %vm1098_vm2, %v1094_v57, 0  ;;  %v1146_v1 = vsel %vm1098_vm2, %v1029_v58, 0  ;;  %v2015_v3 = vsel %vm1098_vm2, %v1252_v52, 0  ;;  %v2017_v4 = vsel %vm1098_vm2, %v1364_v59, 0 }
 0x283   : > { %v1016_v5 = vsel %vm1015_vm15, %v1014_v60, -inf  ;;  %v1081_v6 = vsel %vm1015_vm15, %v1080_v61, -inf  ;;  %1719 = vmatpush3.bf16.msra.mxu1 %v1100_v0  ;;  %1725 = vmatpush3.bf16.msra.mxu0 %v1146_v1 }
 0x284   : > { %1017 = vmax.xlane.f32.xlu1 %v1016_v5  ;;  %v1011_v7 = vpop.f32.mrf.mxu1  ;;  %1082 = vmax.xlane.f32.xlu0 %v1081_v6  ;;  %v1077_v8 = vpop.f32.mrf.mxu0 }
 0x285   : > { %1730 = vmatprep.subr.bf16.mxu1 %v1796_v2  ;;  %1736 = vmatprep.subr.bf16.mxu0 %v1796_v2 }
 0x286   : > { %v1711_v10 = vpop.f32.mrf.mxu1  ;;  %v1717_v11 = vpop.f32.mrf.mxu0 }
 0x30d   : > { %v1083_v12 = vpop.xlane.xlu0 %1082  ;;  %v1018_v27 = vpop.xlane.xlu1 %1017 }
 0x30e   : > { %v1084_v13 = vsub.f32 %v1080_v61, %v1083_v12  ;;  %v1019_v28 = vsub.f32 %v1014_v60, %v1018_v27 }
 0x310   : > { %v1085_v14 = vmul.f32 1.442695, %v1084_v13  ;;  %v1020_v29 = vmul.f32 1.442695, %v1019_v28  ;;  %v1412_v13 = vld [vmem:[%s2094_s8] sm:$0xff] }
 0x312   : > { %1770 = vpow2.f32 %v1085_v14 }
 0x31f   : > { %v1771_v15 = vpop.eup %1770 }
 0x320   : > { %v1087_v16 = vsel %vm1015_vm15, %v1771_v15, 0.0 }
 0x321   : > { %1088 = vadd.xlane.f32.xlu0 %v1087_v16 }
 0x3aa   : > { %v1089_v17 = vpop.xlane.xlu0 %1088 }
 0x3ab   : > { %1772 = vrcp.f32 %v1089_v17 }
 0x3ac   : > { %1774 = vpow2.f32 %v1020_v29 }
 0x3b8   : > { %v1773_v19 = vpop.eup %1772 }
 0x3b9   : > { %v1091_v20 = vmul.f32 %v1773_v19, %v1771_v15  ;;  %v1775_v39 = vpop.eup %1774 }
 0x3ba   : > { %v1022_v41 = vsel %vm1015_vm15, %v1775_v39, 0.0 }
 0x3bb   : > { %v1092_v22 = vpack.c.bf16 %v1091_v20, %v1091_v20 }
 0x3bd   : > { %1721 = vmatmul.mubr.msk.bf16.vlgmr.msra.gmra.mxu1 %vm1015_vm15, %v1092_v22 }
 0x3be   : > { %1731 = vmatpush3.bf16.xpose.msra.mxu1 %v1196_v23  ;;  %1732 = vmatprep.mubr.msk.bf16.mxu1 %vm1797_vm0, %v1796_v2 }
 0x3bf   : > { %1742 = vmatprep.subr.bf16.mxu1 %v1796_v2 }
 0x3c5   : > { %1733 = vmatmul.mubr.msk.bf16.vlgmr.msra.gmra.mxu1 %vm422_vm1, %v1996_v38 }
 0x3c6   : > { %1743 = vmatpush3.bf16.xpose.msra.mxu1 %v1308_v26  ;;  %1744 = vmatprep.mubr.msk.bf16.mxu1 %vm1797_vm0, %v1796_v2  ;;  %v1612_v26 = vld [vmem:[%s2095_s9] ss:$0 sm:$0xff] }
 0x3c7   : > { %1754 = vmatprep.subr.bf16.mxu1 %v1796_v2 }
 0x3cd   : > { %1745 = vmatmul.mubr.msk.bf16.vlgmr.msra.gmra.mxu1 %vm422_vm1, %v1996_v38 }
 0x3ce   : > { %1756 = vmatprep.mubr.msk.bf16.mxu1 %vm1797_vm0, %v1796_v2 }
 0x47d   : > { %v2041_v30 = vpop.f32.mrf.mxu1 }
 0x47f   : > { %v1722_v31 = vpop.f32.mrf.mxu1 }
 0x481   : > { %v1139_v32 = vpop.f32.mrf.mxu1 }
 0x483   : > { %v1723_v33 = vpop.f32.mrf.mxu1 }
 0x485   : > { %v1232_v34 = vpop.f32.mrf.mxu1 }
 0x486   : > { %v1238_v35 = vmul.f32 0.5, %v1232_v34 }
 0x487   : > { %v1734_v36 = vpop.f32.mrf.mxu1 }
 0x488   : > { %v1239_v37 = vsel %vm1015_vm15, %v1238_v35, -inf }
 0x489   : > { %1240 = vmax.xlane.f32.xlu1 %v1239_v37  ;;  %v1235_v38 = vpop.f32.mrf.mxu1 }
 0x48b   : > { %v1735_v40 = vpop.f32.mrf.mxu1 }
 0x48d   : > { %1023 = vadd.xlane.f32.xlu1 %v1022_v41  ;;  %v1344_v42 = vpop.f32.mrf.mxu1 }
 0x48e   : > { %v1350_v43 = vmul.f32 0.5, %v1344_v42 }
 0x48f   : > { %v1746_v44 = vpop.f32.mrf.mxu1 }
 0x490   : > { %v1351_v45 = vsel %vm1015_vm15, %v1350_v43, -inf  ;;  %v1615_v44 = vld [vmem:[%s2096_s10 + $0x1] ss:$0 sm:$0xff] }
 0x491   : > { %1352 = vmax.xlane.f32.xlu0 %v1351_v45  ;;  %v1347_v46 = vpop.f32.mrf.mxu1 }
 0x493   : > { %v1747_v47 = vpop.f32.mrf.mxu1 }
 0x512   : > { %v1241_v48 = vpop.xlane.xlu1 %1240 }
 0x513   : > { %v1242_v49 = vsub.f32 %v1238_v35, %v1241_v48 }
 0x515   : > { %v1243_v50 = vmul.f32 1.442695, %v1242_v49 }
 0x516   : > { %v1024_v51 = vpop.xlane.xlu1 %1023 }
 0x517   : > { %1776 = vpow2.f32 %v1243_v50 }
 0x518   : > { %1778 = vrcp.f32 %v1024_v51 }
 0x51a   : > { %v1353_v53 = vpop.xlane.xlu0 %1352 }
 0x51b   : > { %v1354_v54 = vsub.f32 %v1350_v43, %v1353_v53 }
 0x51d   : > { %v1355_v55 = vmul.f32 1.442695, %v1354_v54 }
 0x51f   : > { %1780 = vpow2.f32 %v1355_v55 }
 0x524   : > { %v1777_v56 = vpop.eup %1776 }
 0x525   : > { %v1779_v57 = vpop.eup %1778  ;;  %v1245_v58 = vsel %vm1015_vm15, %v1777_v56, 0.0 }
 0x526   : > { %1246 = vadd.xlane.f32.xlu0 %v1245_v58  ;;  %v1026_v52 = vmul.f32 %v1779_v57, %v1775_v39 }
 0x528   : > { %v1027_v59 = vpack.c.bf16 %v1026_v52, %v1026_v52 }
 0x52a   : > { %1727 = vmatmul.mubr.msk.bf16.vlgmr.msra.gmra.mxu0 %vm1015_vm15, %v1027_v59 }
 0x52b   : > { %1737 = vmatpush3.bf16.msra.mxu0 %v2015_v3  ;;  %1738 = vmatprep.mubr.msk.bf16.mxu0 %vm1797_vm0, %v1796_v2 }
 0x52c   : > { %v1781_v60 = vpop.eup %1780  ;;  %1748 = vmatprep.subr.bf16.mxu0 %v1796_v2 }
 0x52d   : > { %v1357_v61 = vsel %vm1015_vm15, %v1781_v60, 0.0 }
 0x52e   : > { %1358 = vadd.xlane.f32.xlu1 %v1357_v61 }
 0x5af   : > { %v1247_v62 = vpop.xlane.xlu0 %1246 }
 0x5b0   : > { %1782 = vrcp.f32 %v1247_v62 }
 0x5b7   : > { %v1359_v63 = vpop.xlane.xlu1 %1358 }
 0x5b8   : > { %1784 = vrcp.f32 %v1359_v63 }
 0x5bd   : > { %v1783_v0 = vpop.eup %1782 }
 0x5be   : > { %v1249_v1 = vmul.f32 %v1783_v0, %v1777_v56 }
 0x5c0   : > { %v1250_v5 = vpack.c.bf16 %v1249_v1, %v1249_v1 }
 0x5c2   : > { %1739 = vmatmul.mubr.msk.bf16.vlgmr.msra.gmra.mxu0 %vm1015_vm15, %v1250_v5 }
 0x5c3   : > { %1749 = vmatpush3.bf16.msra.mxu0 %v2017_v4  ;;  %1750 = vmatprep.mubr.msk.bf16.mxu0 %vm1797_vm0, %v1796_v2  ;;  %v1413_v4 = vld [vmem:[%s2094_s8 + $0x8] sm:$0xff] }
 0x5c4   : > { %v1415_v14 = vpack.c.bf16 %v1413_v4, %v1412_v13 }
 0x5c5   : > { %v1785_v3 = vpop.eup %1784 }
 0x5c6   : > { %v1361_v6 = vmul.f32 %v1785_v3, %v1781_v60  ;;  %1755 = vmatpush3.bf16.msra.mxu1 %v1415_v14 }
 0x5c8   : > { %v1362_v7 = vpack.c.bf16 %v1361_v6, %v1361_v6 }
 0x5ca   : > { %1751 = vmatmul.mubr.msk.bf16.vlgmr.msra.gmra.mxu0 %vm1015_vm15, %v1362_v7 }
 0x5ea   : > { %v1182_v8 = vpop.f32.mrf.mxu0 }
 0x5eb   : > { %v1183_v17 = vadd.f32 %v1182_v8, %v2041_v30 }
 0x5ec   : > { %v1728_v10 = vpop.f32.mrf.mxu0 }
 0x5ee   : > { %v1185_v11 = vpop.f32.mrf.mxu0 }
 0x5f0   : > { %v1729_v12 = vpop.f32.mrf.mxu0 }
 0x682   : > { %v1293_v2 = vpop.f32.mrf.mxu0 }
 0x683   : > { %v1299_v19 = vadd.f32 %v1293_v2, %v1183_v17 }
 0x684   : > { %v1740_v15 = vpop.f32.mrf.mxu0 }
 0x686   : > { %v1296_v16 = vpop.f32.mrf.mxu0 }
 0x688   : > { %v1741_v18 = vpop.f32.mrf.mxu0 }
 0x68a   : > { %v1405_v20 = vpop.f32.mrf.mxu0 }
 0x68b   : > { %v1411_v21 = vadd.f32 %v1405_v20, %v1299_v19 }
 0x68c   : > { %v1752_v22 = vpop.f32.mrf.mxu0 }
 0x68d   : > { %v1414_v23 = vpack.c.bf16 %v1411_v21, %v1411_v21 }
 0x68e   : > { %v1408_v24 = vpop.f32.mrf.mxu0 }
 0x68f   : > { %1757 = vmatmul.mubr.msk.bf16.vlgmr.msra.gmra.mxu1 %vm422_vm1, %v1414_v23 }
 0x690   : > { %v1753_v25 = vpop.f32.mrf.mxu0 }
 0x74f   : > { %v1460_v27 = vpop.f32.mrf.mxu1 }
 0x750   : > { %v1461_v28 = vadd.f32 %v1612_v26, %v1460_v27 }
 0x751   : > { %v1758_v29 = vpop.f32.mrf.mxu1 }
 0x752   : > { %v1466_v31 = vadd.f32 %v1461_v28, %v1902_v9  ;;  %v1614_v9 = vld [vmem:[%s2096_s10] ss:$0 sm:$0xff] }
 0x753   : > { %v1463_v30 = vpop.f32.mrf.mxu1 }
 0x754   : > { %v1467_v32 = vsel %vm422_vm1, %v1466_v31, 0.0 }
 0x755   : > { %1468 = vadd.xlane.f32.xlu0 %v1467_v32  ;;  %v1759_v33 = vpop.f32.mrf.mxu1 }
 0x7de   : > { %v1469_v34 = vpop.xlane.xlu0 %1468 }
 0x7df   : > { %v1471_v35 = vmul.f32 0.0625, %v1469_v34 }
 0x7e1   : > { %v1472_v36 = vsub.f32 %v1466_v31, %v1471_v35 }
 0x7e3   : > { %v1473_v37 = vmul.f32 %v1472_v36, %v1472_v36 }
 0x7e5   : > { %v1474_v39 = vsel %vm422_vm1, %v1473_v37, 0.0 }
 0x7e6   : > { %1475 = vadd.xlane.f32.xlu1 %v1474_v39 }
 0x86f   : > { %v1476_v38 = vpop.xlane.xlu1 %1475 }
 0x870   : > { %v1477_v40 = vmul.f32 0.0625, %v1476_v38 }
 0x872   : > { %v1478_v41 = vadd.f32 1e-05, %v1477_v40 }
 0x874   : > { %1786 = vrsqrt.f32 %v1478_v41 }
 0x881   : > { %v1787_v42 = vpop.eup %1786 }
 0x882   : > { %v1480_v43 = vmul.f32 %v1787_v42, %v1472_v36 }
 0x884   : > { %v1486_v45 = vmul.f32 %v1614_v9, %v1480_v43 }
 0x886   : > { %v1492_v46 = vadd.f32 %v1615_v44, %v1486_v45 }
 0x888   : > { %1493 = vst.msk [vmem:[%s415_s21] sm:$0xff] %vm422_vm1, %v1492_v46 }
 0x889 PF: > { %s21_s17 = sadd.s32 1, %s1794_s17  }
 0x88a   : > { %p18_p4 = scmp.ge.s32.totalorder %s21_s17, 4  }
 0x88c   :  { %20 = sbr.rel (!%p18_p4) target bundleno = 1 (0x1), region = 104 }

</bundles_post_ra>
